<compile_context>
chip_gen: v6e
topology: v6e:2x2x1
jax: 0.10.0
libtpu: 0.0.40
codegen_flags: <defaults>
</compile_context>

<pallas_src>
import functools

import jax
import jax.numpy as jnp
from jax.experimental import pallas as pl
from jax.experimental.pallas import tpu as pltpu


def _round_up(x, m):
    return (x + m - 1) // m * m


def _cdiv(a, b):
    return -(-a // b)


def _device_kind():
    try:
        return jax.devices()[0].device_kind.lower()
    except Exception:
        return ""


def _pick_tile_h(Ho, Wo, target_rows=512):
    """Largest divisor of Ho with TH*Wo <= ~target_rows, preferring TH*Wo % 8 == 0."""
    best, best_aligned = 1, None
    for th in range(1, Ho + 1):
        if Ho % th or th * Wo > max(target_rows, Wo):
            continue
        best = th
        if (th * Wo) % 8 == 0:
            best_aligned = th
    return best_aligned or best


def _conv_bn_relu_kernel(x_ref, w_ref, scale_ref, shift_ref, o_ref,
                         *, KH, KW, TH, Wo, relu):
    # Pure stride-1 conv (stride handled by wrapper space-to-depth).
    # x_ref:     (1, Hq, Wq, Cin')    whole phase-packed image (compute dtype)
    # w_ref:     (KH, KW*Cin', TC)    im2col weights, one Cout tile
    # scale_ref: (1, TC) f32          folded BN scale (0 in pad columns)
    # shift_ref: (1, TC) f32          folded BN shift (0 in pad columns)
    # o_ref:     (1, TH, Wo, TC)
    h = pl.program_id(2)
    TC = o_ref.shape[-1]
    RH = TH + KH - 1                                    # input rows this tile
    row0 = pl.multiple_of(h * TH, TH)
    xt = x_ref[0, pl.ds(row0, RH), :, :]                # (RH, Wq, Cin')

    # Per-kernel-row im2col chunks: KH matmuls of depth KW*Cin', accumulated
    # in f32 registers.  Avoids one huge KH*KW*Cin' concat / patch buffer.
    acc = jnp.zeros((TH * Wo, TC), jnp.float32)
    for kh in range(KH):
        taps = []
        for kw in range(KW):
            p = xt[kh:kh + TH, kw:kw + Wo, :]           # (TH, Wo, Cin')
            taps.append(p.reshape(TH * Wo, -1))
        patch = taps[0] if KW == 1 else jnp.concatenate(taps, axis=-1)
        acc = acc + jnp.dot(patch, w_ref[kh],
                            preferred_element_type=jnp.float32)

    # folded BatchNorm (inference) + ReLU; f32 epilogue on the VPU.
    y = acc * scale_ref[...] + shift_ref[...]
    if relu:
        y = jnp.maximum(y, 0.0)
    o_ref[0] = y.reshape(TH, Wo, TC).astype(o_ref.dtype)


def basic_conv(x_nchw, weight, gamma, beta, running_mean, running_var, *,
               stride=1, padding=0, eps=1e-5, relu=True, bn=True,
               compute_dtype=jnp.bfloat16, out_dtype=jnp.float32):
    """Forward pass of BasicConv (Conv2d[bias=False] -> BN(eval) -> ReLU).

    x_nchw:  (N, Cin, H, W) float32
    weight:  (Cout, Cin, KH, KW)  -- PyTorch Conv2d weight layout
    returns: (N, Cout, Ho, Wo) in `out_dtype`
    """
    N, Cin, H, W = x_nchw.shape
    Cout, Cin_w, KH, KW = weight.shape
    assert Cin == Cin_w, "groups != 1 not supported"
    s = int(stride)

    Hp, Wp = H + 2 * padding, W + 2 * padding
    Ho = (Hp - KH) // s + 1
    Wo = (Wp - KW) // s + 1

    # ---- Cout tile: lane-dense; 256 on 256-wide MXUs when it costs no extra pad.
    kind = _device_kind()
    tc_pref = 256 if ("v6" in kind or "v7" in kind or "tpu7" in kind) else 128
    if Cout > 128 and tc_pref == 256 and _round_up(Cout, 256) == _round_up(Cout, 128):
        TC = 256
    else:
        TC = 128
    Cout_p = _round_up(Cout, TC)

    # ---- stride -> space-to-depth so the kernel is always stride-1 ----------
    Hq, Wq = _cdiv(Hp, s), _cdiv(Wp, s)
    KHq, KWq = _cdiv(KH, s), _cdiv(KW, s)
    Cin_s = s * s * Cin

    x_nhwc = jnp.transpose(x_nchw, (0, 2, 3, 1))
    x_pad = jnp.pad(x_nhwc, ((0, 0),
                             (padding, Hq * s - H - padding),
                             (padding, Wq * s - W - padding),
                             (0, 0)))
    x_s2d = (x_pad.reshape(N, Hq, s, Wq, s, Cin)
             .transpose(0, 1, 3, 2, 4, 5)
             .reshape(N, Hq, Wq, Cin_s)
             .astype(compute_dtype))

    # weight: (Cout,Cin,KH,KW) -> (KH,KW,Cin,Cout_p) -> phase-packed im2col
    # rows ordered (qh)(qw, rh, rw, c), matching the kernel's patch columns.
    w_hwio = jnp.transpose(weight, (2, 3, 1, 0))
    w_pad = jnp.pad(w_hwio, ((0, KHq * s - KH), (0, KWq * s - KW),
                             (0, 0), (0, Cout_p - Cout)))
    w3d = (w_pad.reshape(KHq, s, KWq, s, Cin, Cout_p)
           .transpose(0, 2, 1, 3, 4, 5)
           .reshape(KHq, KWq * Cin_s, Cout_p)
           .astype(compute_dtype))

    if bn:
        scale = gamma / jnp.sqrt(running_var + eps)
        shift = beta - running_mean * scale
    else:
        scale = jnp.ones((Cout,), jnp.float32)
        shift = jnp.zeros((Cout,), jnp.float32)
    scale = jnp.pad(scale.astype(jnp.float32), (0, Cout_p - Cout)).reshape(1, Cout_p)
    shift = jnp.pad(shift.astype(jnp.float32), (0, Cout_p - Cout)).reshape(1, Cout_p)

    TH = _pick_tile_h(Ho, Wo, target_rows=512)

    kernel = functools.partial(_conv_bn_relu_kernel, KH=KHq, KW=KWq,
                               TH=TH, Wo=Wo, relu=relu)

    # VMEM cap by generation (v7x: 64 MiB physical; v4/v5/v6: 128 MiB).
    if "v7" in kind or "tpu7" in kind:
        vmem_cap = 56 * 1024 * 1024
    elif "v6" in kind or "v5" in kind or "v4" in kind:
        vmem_cap = 100 * 1024 * 1024
    else:
        vmem_cap = 32 * 1024 * 1024

    itemsize = jnp.dtype(compute_dtype).itemsize
    flops = 2 * N * Ho * Wo * KHq * KWq * Cin_s * Cout_p
    bytes_accessed = (x_s2d.size * itemsize + w3d.size * itemsize
                      + (scale.size + shift.size) * 4
                      + N * Ho * Wo * Cout_p * jnp.dtype(out_dtype).itemsize)

    out_nhwc = pl.pallas_call(
        kernel,
        out_shape=jax.ShapeDtypeStruct((N, Ho, Wo, Cout_p), out_dtype),
        grid_spec=pltpu.PrefetchScalarGridSpec(
            num_scalar_prefetch=0,
            # (N, Cout tiles, row tiles): weight/scale/shift blocks depend only
            # on c, so with h innermost they stay resident across row tiles;
            # the image block depends only on n and is fetched once per image.
            grid=(N, Cout_p // TC, Ho // TH),
            in_specs=[
                pl.BlockSpec((1, Hq, Wq, Cin_s), lambda n, c, h: (n, 0, 0, 0)),
                pl.BlockSpec((KHq, KWq * Cin_s, TC), lambda n, c, h: (0, 0, c)),
                pl.BlockSpec((1, TC), lambda n, c, h: (0, c)),
                pl.BlockSpec((1, TC), lambda n, c, h: (0, c)),
            ],
            out_specs=pl.BlockSpec((1, TH, Wo, TC),
                                   lambda n, c, h: (n, h, 0, c)),
        ),
        compiler_params=pltpu.CompilerParams(
            dimension_semantics=("parallel", "parallel", "parallel"),
            vmem_limit_bytes=vmem_cap),
        cost_estimate=pl.CostEstimate(flops=flops, transcendentals=0,
                                      bytes_accessed=bytes_accessed),
    )(x_s2d, w3d, scale, shift)

    out_nhwc = out_nhwc[..., :Cout]                 # drop Cout padding
    return jnp.transpose(out_nhwc, (0, 3, 1, 2))    # back to NCHW


def _reference(x_nchw, weight, gamma, beta, mean, var, *, stride, padding,
               eps=1e-5, relu=True, bn=True, compute_dtype=jnp.bfloat16):
    # Reference with the same bf16 operands / f32 accumulation as the kernel.
    y = jax.lax.conv_general_dilated(
        x_nchw.astype(compute_dtype), weight.astype(compute_dtype),
        window_strides=(stride, stride),
        padding=[(padding, padding), (padding, padding)],
        dimension_numbers=("NCHW", "OIHW", "NCHW"),
        preferred_element_type=jnp.float32)
    if bn:
        s = (gamma / jnp.sqrt(var + eps)).reshape(1, -1, 1, 1)
        b = (beta - mean * gamma / jnp.sqrt(var + eps)).reshape(1, -1, 1, 1)
        y = y * s + b
    if relu:
        y = jnp.maximum(y, 0.0)
    return y


if __name__ == "__main__":
    key = jax.random.PRNGKey(0)
    N, Cin, H, W, Cout = 2, 4, 16, 16, 8

    # (kernel_size, stride, padding, relu, out_dtype, tolerance)
    configs = [
        (3, 1, 1, True, jnp.float32, 2e-3),     # BasicConv(4, 8, 3, 1, 1)
        (3, 2, 1, True, jnp.float32, 2e-3),     # stride-2 path
        (1, 1, 0, False, jnp.bfloat16, 6e-2),   # 1x1, no ReLU, bf16 output
    ]

    for (K, stride, padding, relu, out_dtype, tol) in configs:
        key, kx, kw, kg, kb, km, kv = jax.random.split(key, 7)
        x = jax.random.normal(kx, (N, Cin, H, W), jnp.float32)
        weight = jax.random.normal(kw, (Cout, Cin, K, K), jnp.float32) * 0.1
        gamma = 1.0 + 0.1 * jax.random.normal(kg, (Cout,), jnp.float32)
        beta = 0.1 * jax.random.normal(kb, (Cout,), jnp.float32)
        running_mean = 0.1 * jax.random.normal(km, (Cout,), jnp.float32)
        running_var = jnp.abs(jax.random.normal(kv, (Cout,), jnp.float32)) + 0.5

        out = basic_conv(x, weight, gamma, beta, running_mean, running_var,
                         stride=stride, padding=padding, relu=relu, bn=True,
                         out_dtype=out_dtype)
        out = jax.block_until_ready(out).astype(jnp.float32)

        ref = _reference(x, weight, gamma, beta, running_mean, running_var,
                         stride=stride, padding=padding, relu=relu, bn=True)
        Ho = (H + 2 * padding - K) // stride + 1
        assert out.shape == (N, Cout, Ho, Ho), out.shape
        max_err = float(jnp.max(jnp.abs(out - ref.astype(jnp.float32))))
        assert max_err <= tol, (
            f"mismatch (K={K}, stride={stride}, pad={padding}): "
            f"max abs err = {max_err}")

    print("KERNEL_OK")
</pallas_src>

<mosaic_0001>
module attributes {stable_mosaic.version = 11 : i64} {
  func.func @_conv_bn_relu_kernel(%arg0: i32, %arg1: i32, %arg2: i32, %arg3: memref<1x18x18x4xbf16, #tpu.memory_space<vmem>>, %arg4: memref<3x12x128xbf16, #tpu.memory_space<vmem>>, %arg5: memref<1x128xf32, #tpu.memory_space<vmem>>, %arg6: memref<1x128xf32, #tpu.memory_space<vmem>>, %arg7: memref<1x16x16x128xf32, #tpu.memory_space<vmem>>) attributes {dimension_semantics = [#tpu.dimension_semantics<parallel>, #tpu.dimension_semantics<parallel>, #tpu.dimension_semantics<parallel>], iteration_bounds = array<i64: 2, 1, 1>, scalar_prefetch = 0 : i64, scratch_operands = 0 : i64, tpu.core_type = #tpu.core_type<tc>, window_params = [{transform_indices = @transform_0, window_bounds = array<i64: 1, 18, 18, 4>}, {transform_indices = @transform_1, window_bounds = array<i64: 3, 12, 128>}, {transform_indices = @transform_2, window_bounds = array<i64: 1, 128>}, {transform_indices = @transform_3, window_bounds = array<i64: 1, 128>}, {transform_indices = @transform_4, window_bounds = array<i64: 1, 16, 16, 128>}]} {
    %c16_i32 = arith.constant 16 : i32
    %0 = arith.muli %arg2, %c16_i32 : i32
    %1 = tpu.assume_multiple %0, 16 : i32
    %c0 = arith.constant 0 : index
    %2 = arith.index_cast %1 : i32 to index
    %c0_0 = arith.constant 0 : index
    %c0_1 = arith.constant 0 : index
    %3 = vector.load %arg3[%c0, %2, %c0_0, %c0_1] : memref<1x18x18x4xbf16, #tpu.memory_space<vmem>>, vector<1x18x18x4xbf16>
    %4 = vector.shape_cast %3 : vector<1x18x18x4xbf16> to vector<18x18x4xbf16>
    %cst = arith.constant 0.000000e+00 : f32
    %5 = vector.broadcast %cst : f32 to vector<256x128xf32>
    %6 = vector.extract_strided_slice %4 {offsets = [0, 0, 0], sizes = [16, 16, 4], strides = [1, 1, 1]} : vector<18x18x4xbf16> to vector<16x16x4xbf16>
    %7 = vector.shape_cast %6 : vector<16x16x4xbf16> to vector<256x4xbf16>
    %8 = vector.extract_strided_slice %4 {offsets = [0, 1, 0], sizes = [16, 16, 4], strides = [1, 1, 1]} : vector<18x18x4xbf16> to vector<16x16x4xbf16>
    %9 = vector.shape_cast %8 : vector<16x16x4xbf16> to vector<256x4xbf16>
    %10 = vector.extract_strided_slice %4 {offsets = [0, 2, 0], sizes = [16, 16, 4], strides = [1, 1, 1]} : vector<18x18x4xbf16> to vector<16x16x4xbf16>
    %11 = vector.shape_cast %10 : vector<16x16x4xbf16> to vector<256x4xbf16>
    %12 = tpu.concatenate %7, %9, %11 in 1 : vector<256x4xbf16>, vector<256x4xbf16>, vector<256x4xbf16> -> vector<256x12xbf16>
    %c0_2 = arith.constant 0 : index
    %c0_3 = arith.constant 0 : index
    %c0_4 = arith.constant 0 : index
    %13 = vector.load %arg4[%c0_2, %c0_3, %c0_4] : memref<3x12x128xbf16, #tpu.memory_space<vmem>>, vector<1x12x128xbf16>
    %14 = vector.shape_cast %13 : vector<1x12x128xbf16> to vector<12x128xbf16>
    %cst_5 = arith.constant dense<0.000000e+00> : vector<256x128xf32>
    %15 = tpu.matmul %12, %14, %cst_5 {dimension_numbers = #tpu.dot_dimension_numbers<[1], [0], [0], [1], [0, 0, 1, 1], [], []>} : vector<256x12xbf16>, vector<12x128xbf16>, vector<256x128xf32> -> vector<256x128xf32>
    %16 = arith.addf %5, %15 : vector<256x128xf32>
    %17 = vector.extract_strided_slice %4 {offsets = [1, 0, 0], sizes = [16, 16, 4], strides = [1, 1, 1]} : vector<18x18x4xbf16> to vector<16x16x4xbf16>
    %18 = vector.shape_cast %17 : vector<16x16x4xbf16> to vector<256x4xbf16>
    %19 = vector.extract_strided_slice %4 {offsets = [1, 1, 0], sizes = [16, 16, 4], strides = [1, 1, 1]} : vector<18x18x4xbf16> to vector<16x16x4xbf16>
    %20 = vector.shape_cast %19 : vector<16x16x4xbf16> to vector<256x4xbf16>
    %21 = vector.extract_strided_slice %4 {offsets = [1, 2, 0], sizes = [16, 16, 4], strides = [1, 1, 1]} : vector<18x18x4xbf16> to vector<16x16x4xbf16>
    %22 = vector.shape_cast %21 : vector<16x16x4xbf16> to vector<256x4xbf16>
    %23 = tpu.concatenate %18, %20, %22 in 1 : vector<256x4xbf16>, vector<256x4xbf16>, vector<256x4xbf16> -> vector<256x12xbf16>
    %c1 = arith.constant 1 : index
    %c0_6 = arith.constant 0 : index
    %c0_7 = arith.constant 0 : index
    %24 = vector.load %arg4[%c1, %c0_6, %c0_7] : memref<3x12x128xbf16, #tpu.memory_space<vmem>>, vector<1x12x128xbf16>
    %25 = vector.shape_cast %24 : vector<1x12x128xbf16> to vector<12x128xbf16>
    %cst_8 = arith.constant dense<0.000000e+00> : vector<256x128xf32>
    %26 = tpu.matmul %23, %25, %cst_8 {dimension_numbers = #tpu.dot_dimension_numbers<[1], [0], [0], [1], [0, 0, 1, 1], [], []>} : vector<256x12xbf16>, vector<12x128xbf16>, vector<256x128xf32> -> vector<256x128xf32>
    %27 = arith.addf %16, %26 : vector<256x128xf32>
    %28 = vector.extract_strided_slice %4 {offsets = [2, 0, 0], sizes = [16, 16, 4], strides = [1, 1, 1]} : vector<18x18x4xbf16> to vector<16x16x4xbf16>
    %29 = vector.shape_cast %28 : vector<16x16x4xbf16> to vector<256x4xbf16>
    %30 = vector.extract_strided_slice %4 {offsets = [2, 1, 0], sizes = [16, 16, 4], strides = [1, 1, 1]} : vector<18x18x4xbf16> to vector<16x16x4xbf16>
    %31 = vector.shape_cast %30 : vector<16x16x4xbf16> to vector<256x4xbf16>
    %32 = vector.extract_strided_slice %4 {offsets = [2, 2, 0], sizes = [16, 16, 4], strides = [1, 1, 1]} : vector<18x18x4xbf16> to vector<16x16x4xbf16>
    %33 = vector.shape_cast %32 : vector<16x16x4xbf16> to vector<256x4xbf16>
    %34 = tpu.concatenate %29, %31, %33 in 1 : vector<256x4xbf16>, vector<256x4xbf16>, vector<256x4xbf16> -> vector<256x12xbf16>
    %c2 = arith.constant 2 : index
    %c0_9 = arith.constant 0 : index
    %c0_10 = arith.constant 0 : index
    %35 = vector.load %arg4[%c2, %c0_9, %c0_10] : memref<3x12x128xbf16, #tpu.memory_space<vmem>>, vector<1x12x128xbf16>
    %36 = vector.shape_cast %35 : vector<1x12x128xbf16> to vector<12x128xbf16>
    %cst_11 = arith.constant dense<0.000000e+00> : vector<256x128xf32>
    %37 = tpu.matmul %34, %36, %cst_11 {dimension_numbers = #tpu.dot_dimension_numbers<[1], [0], [0], [1], [0, 0, 1, 1], [], []>} : vector<256x12xbf16>, vector<12x128xbf16>, vector<256x128xf32> -> vector<256x128xf32>
    %38 = arith.addf %27, %37 : vector<256x128xf32>
    %c0_12 = arith.constant 0 : index
    %c0_13 = arith.constant 0 : index
    %39 = vector.load %arg5[%c0_12, %c0_13] : memref<1x128xf32, #tpu.memory_space<vmem>>, vector<1x128xf32>
    %40 = vector.broadcast %39 : vector<1x128xf32> to vector<256x128xf32>
    %41 = arith.mulf %38, %40 : vector<256x128xf32>
    %c0_14 = arith.constant 0 : index
    %c0_15 = arith.constant 0 : index
    %42 = vector.load %arg6[%c0_14, %c0_15] : memref<1x128xf32, #tpu.memory_space<vmem>>, vector<1x128xf32>
    %43 = vector.broadcast %42 : vector<1x128xf32> to vector<256x128xf32>
    %44 = arith.addf %41, %43 : vector<256x128xf32>
    %cst_16 = arith.constant 0.000000e+00 : f32
    %45 = vector.broadcast %cst_16 : f32 to vector<256x128xf32>
    %46 = arith.maximumf %44, %45 : vector<256x128xf32>
    %47 = vector.shape_cast %46 : vector<256x128xf32> to vector<16x16x128xf32>
    %c0_17 = arith.constant 0 : index
    %c0_18 = arith.constant 0 : index
    %c0_19 = arith.constant 0 : index
    %c0_20 = arith.constant 0 : index
    %48 = vector.load %arg7[%c0_17, %c0_18, %c0_19, %c0_20] : memref<1x16x16x128xf32, #tpu.memory_space<vmem>>, vector<1x16x16x128xf32>
    %49 = vector.shape_cast %48 : vector<1x16x16x128xf32> to vector<16x16x128xf32>
    %50 = vector.shape_cast %47 : vector<16x16x128xf32> to vector<1x16x16x128xf32>
    tpu.vector_store %arg7[%c0_17, %c0_18, %c0_19, %c0_20], %50 {strides = array<i32>} : memref<1x16x16x128xf32, #tpu.memory_space<vmem>>, vector<1x16x16x128xf32>,
    return
  }
  func.func @transform_0(%arg0: i32, %arg1: i32, %arg2: i32) -> (i32, i32, i32, i32) {
    %c0_i32 = arith.constant 0 : i32
    %c0_i32_0 = arith.constant 0 : i32
    %c0_i32_1 = arith.constant 0 : i32
    %c0_i32_2 = arith.constant 0 : i32
    return %arg0, %c0_i32, %c0_i32_0, %c0_i32_1 : i32, i32, i32, i32
  }
  func.func @transform_1(%arg0: i32, %arg1: i32, %arg2: i32) -> (i32, i32, i32) {
    %c0_i32 = arith.constant 0 : i32
    %c0_i32_0 = arith.constant 0 : i32
    %c0_i32_1 = arith.constant 0 : i32
    return %c0_i32, %c0_i32_0, %arg1 : i32, i32, i32
  }
  func.func @transform_2(%arg0: i32, %arg1: i32, %arg2: i32) -> (i32, i32) {
    %c0_i32 = arith.constant 0 : i32
    %c0_i32_0 = arith.constant 0 : i32
    return %c0_i32, %arg1 : i32, i32
  }
  func.func @transform_3(%arg0: i32, %arg1: i32, %arg2: i32) -> (i32, i32) {
    %c0_i32 = arith.constant 0 : i32
    %c0_i32_0 = arith.constant 0 : i32
    return %c0_i32, %arg1 : i32, i32
  }
  func.func @transform_4(%arg0: i32, %arg1: i32, %arg2: i32) -> (i32, i32, i32, i32) {
    %c0_i32 = arith.constant 0 : i32
    %c0_i32_0 = arith.constant 0 : i32
    return %arg0, %arg2, %c0_i32, %arg1 : i32, i32, i32, i32
  }
}

</mosaic_0001>

<bundles_post_ra>
// kernel: tpu_custom_call.1
= control target key start
LH: loop header
LB: loop body
LE: loop exit
PB: predicated region body
PF: predicated region fallthrough
CT: control target
= control target key end

     0   :  { %9 = vsyncpa [#allocation3], 0  ;;  %s3590_s0 = inlined_call_operand.vmem [shape: bf16[2,18,18,4], index: 0, kind: input, shape index: {}]   ;;  %s3591_s1 = inlined_call_operand.vmem [shape: bf16[3,12,128], index: 1, kind: input, shape index: {}]   ;;  %s3592_s2 = inlined_call_operand.vmem [shape: f32[1,128], index: 2, kind: input, shape index: {}]   ;;  %s3593_s3 = inlined_call_operand.vmem [shape: f32[1,128], index: 3, kind: input, shape index: {}]   ;;  %s3594_s4 = inlined_call_operand.hbm [shape: f32[2,16,16,128], index: 4, kind: output, shape index: {}]  }
   0x1   :  { %11 = vsyncpa [#allocation3 + $0x1], 0  ;;  %s2628_s15 = smov 0   ;;  %s2630_s16 = smov 0  }
   0x2   :  { %s2632_s17 = smov 0   ;;  %s2634_s18 = smov 0  }
   0x3   :  { %s2636_s19 = smov 0   ;;  %s2638_s20 = smov 0  }
   0x4 LB: > { %s2131_s21 = sadd.s32 4294967295, %s2597_s20   ;;  %s2132_s22 = sadd.s32 4294967294, %s2597_s20   ;;  %s2597_s20 = sphi %s2638_s20, %s17_s20   ;;  %s2593_s19 = sphi %s2636_s19, %s3605_s19   ;;  %s2589_s18 = sphi %s2634_s18, %s3604_s18   ;;  %s2585_s17 = sphi %s2632_s17, %s3603_s17   ;;  %s2581_s16 = sphi %s2630_s16, %s3602_s16   ;;  %s2577_s15 = sphi %s2628_s15, %s3601_s15  }
   0x5   : > { %s36_s23 = sadd.s32 1, %s2593_s19  ;;  %s151_s24 = sadd.s32 1, %s2585_s17 }
   0x6   : > { %p38_p0 = scmp.ge.s32.totalorder %s36_s23, 2  ;;  %p161_p1 = scmp.ne.s32.totalorder %s2585_s17, %s2581_s16 }
   0x7   : > { %p162_p2 = scmp.eq.s32.totalorder %s2131_s21, 1  ;;  %p167_p3 = scmp.ne.s32.totalorder %s2581_s16, %s2577_s15 }
   0x8   : > { %s3607_s23 = smov (%p38_p0, %s36_s23), 0  ;;  %p168_p5 = scmp.eq.s32.totalorder %s2132_s22, 1 }
   0x9   : > { %p2668_p4 = por %p162_p2, %p161_p1  ;;  %s144_s26 = ssub.s32 %s2593_s19, %s3607_s23 }
   0xa   : > { %p2138_p6 = scmp.ge.s32.totalorder %s2597_s20, 1  ;;  %p149_p7 = scmp.eq.s32.totalorder %s144_s26, 0 }
   0xb   : > { %p2675_p8 = por %p168_p5, %p167_p3  ;;  %p213_p9 = scmp.lt.s32.totalorder %s2597_s20, 3 }
   0xc   : > { %s2681_s28 = scalar_select %p149_p7, %s2585_s17, %s151_s24  }
   0xd   : > { %p214_p10 = pnand %p2138_p6, %p213_p9 }
   0xe   : > { %p249_p11 = scmp.lt.s32.totalorder (!%p214_p10), %s2589_s18, 1  ;;  %s2599_s8 = smov (!%p214_p10), 8  }
   0xf   : > { %217 = sbr.rel (%p214_p10) target bundleno = 531 (0x213), region = 36  ;;  %s2600_s9 = smov (!%p214_p10), 4  }
  0x10   : > { %s246_s22 = sand.u32 (!%p214_p10), 1, %s2581_s16   ;;  %s2601_s14 = smov (!%p214_p10), [#allocation2]  }
  0x11   : > { %s2139_s5 = sshll.u32 (!%p214_p10), %s246_s22, 8  ;;  %s2525_s21 = sshll.u32 (!%p214_p10), %s2601_s14, 4  ;;  %s2526_s21 = int_to_ptr.vmem [resolvable:$false] %s2525_s21 }
  0x12   : > { %s3415_s6 = scalar_lea.vmem (!%p214_p10), [#allocation2], %s2139_s5  ;;  %s2527_s24 = scalar_lea.vmem (!%p214_p10), %s2526_s21, 8192 }
  0x14   : > { %vm759_vm0 = vcmask 1042432   ;;  %s250_s29 = scalar_select %p249_p11, %s2589_s18, 1  ;;  %vm760_vm1 = vcmask 1046532   ;;  %vm324_vm3 = vsmask.f32 3328  ;;  %vm1259_vm6 = vcmask 1045504  }
  0x15   : > { %vm2690_vm2 = vmor %vm759_vm0, %vm760_vm1  ;;  %vm325_vm4 = vsmask.f32 7440  ;;  %vm1082_vm7 = vcmask 31744   ;;  %vm1131_vm8 = vcmask 64512   ;;  %vm1226_vm9 = vcmask 97280  }
  0x16   : > { %s2435_s30 = smul.u32 216, %s250_s29  ;;  %vm2760_vm5 = vmor %vm324_vm3, %vm325_vm4 }
  0x18   : > { %s2688_s7 = scalar_lea.vmem %s3590_s0, %s2435_s30 }
  0x19   : > { %v2695_v1 = vld [vmem:[%s2688_s7 + $0x78] sm:$0xf]  ;;  %v2698_v2 = vld [vmem:[%s2688_s7 + $0x7c] sm:$0xf]  ;;  %v2701_v3 = vld [vmem:[%s2688_s7 + $0x80] sm:$0x1] }
  0x1a   : > { %v587_v4 = vshll.u32 %v2701_v3, 16  ;;  %v2151_v5 = vrot.slane %v2695_v1, 9  ;;  %v834_v6 = vrot.slane %v2698_v2, 5  ;;  %v837_v7 = vrot.slane %v2701_v3, 5  ;;  %v2708_v8 = vld [vmem:[%s2688_s7 + $0x6c] sm:$0xf] }
  0x1b   : > { %v2711_v9 = vld [vmem:[%s2688_s7 + $0x70] sm:$0xf]  ;;  %v299_v10 = vld [vmem:[%s2688_s7 + $0x74] sm:$0x1]  ;;  %v2150_v11 = vrot.slane %v2708_v8, 9  ;;  %v544_v12 = vshrl.u32 %v2708_v8, 16 }
  0x1c   : > { %v835_v13 = vsel %vm2690_vm2, %v2151_v5, %v834_v6  ;;  %v836_v14 = vrot.slane %v834_v6, 4  ;;  %v563_v15 = vshll.u32 %v299_v10, 16  ;;  %v827_v16 = vrot.slane %v2711_v9, 5  ;;  %v2720_v17 = vld [vmem:[%s2688_s7 + $0x18] sm:$0xf] }
  0x1d   : > { %v830_v18 = vrot.slane %v299_v10, 5  ;;  %v2723_v19 = vld [vmem:[%s2688_s7 + $0x1c] sm:$0xf]  ;;  %v2726_v20 = vld [vmem:[%s2688_s7 + $0x20] sm:$0x1]  ;;  %v2143_v21 = vrot.slane %v2720_v17, 9  ;;  %v2166_v22 = vcombine.low %v2708_v8, %v2711_v9 }
  0x1e   : > { %v838_v23 = vsel %vm2690_vm2, %v836_v14, %v837_v7  ;;  %v828_v24 = vsel %vm2690_vm2, %v2150_v11, %v827_v16  ;;  %v829_v25 = vrot.slane %v827_v16, 4  ;;  %v778_v26 = vrot.slane %v2723_v19, 5  ;;  %v273_v27 = vld [vmem:[%s2688_s7 + $0xc] sm:$0xf]  ;;  %v274_v28 = vld [vmem:[%s2688_s7 + $0x10] sm:$0xf] }
  0x1f   : > { %v2199_v29 = vcombine.low %v835_v13, %v838_v23  ;;  %v781_v30 = vrot.slane %v2726_v20, 5  ;;  %v275_v31 = vld [vmem:[%s2688_s7 + $0x14] sm:$0x1]  ;;  %v2142_v32 = vrot.slane %v273_v27, 9  ;;  %v771_v33 = vrot.slane %v274_v28, 5 }
  0x20   : > { %v831_v34 = vsel %vm2690_vm2, %v829_v25, %v830_v18  ;;  %v779_v35 = vsel %vm2690_vm2, %v2143_v21, %v778_v26  ;;  %v780_v36 = vrot.slane %v778_v26, 4  ;;  %v774_v37 = vrot.slane %v275_v31, 5 }
  0x21   : > { %1070 = vrot.lane.b32.xlu0 %v2199_v29, %s2599_s8  ;;  %v2198_v38 = vcombine.low %v828_v24, %v831_v34  ;;  %v772_v39 = vsel %vm2690_vm2, %v2142_v32, %v771_v33  ;;  %v773_v40 = vrot.slane %v771_v33, 4  ;;  %v546_v41 = vrot.slane %v544_v12, 4  ;;  %v2782_v34 = vld [vmem:[%s2688_s7 + $0x84] sm:$0xf] }
  0x22   : > { %v782_v42 = vsel %vm2690_vm2, %v780_v36, %v781_v30  ;;  %v547_v43 = vshll.u32 %v2708_v8, 16  ;;  %v553_v44 = vshll.u32 %v2711_v9, 16  ;;  %v557_v45 = vshrl.u32 %v2711_v9, 16 }
  0x23   : > { %1068 = vrot.lane.b32.xlu1 %v2198_v38, %s2599_s8  ;;  %v2191_v46 = vcombine.low %v779_v35, %v782_v42  ;;  %v775_v47 = vsel %vm2690_vm2, %v773_v40, %v774_v37  ;;  %v565_v48 = vrot.slane %v563_v15, 5  ;;  %v352_v49 = vshrl.u32 %v273_v27, 16 }
  0x24   : > { %v2190_v50 = vcombine.low %v772_v39, %v775_v47  ;;  %v549_v51 = vrot.slane %v547_v43, 5  ;;  %v555_v52 = vrot.slane %v553_v44, 5  ;;  %v559_v53 = vrot.slane %v557_v45, 4  ;;  %v2793_v45 = vld [vmem:[%s2688_s7 + $0x8c] sm:$0x1] }
  0x25   : > { %v354_v54 = vrot.slane %v352_v49, 4  ;;  %v355_v55 = vshll.u32 %v273_v27, 16  ;;  %v361_v56 = vshll.u32 %v274_v28, 16  ;;  %v365_v57 = vshrl.u32 %v274_v28, 16 }
  0x26   : > { %1052 = vrot.lane.b32.xlu0 %v2190_v50, %s2599_s8  ;;  %v550_v58 = vor.u32 %v549_v51, %v546_v41  ;;  %v560_v59 = vor.u32 %v559_v53, %v555_v52  ;;  %v371_v60 = vshll.u32 %v275_v31, 16  ;;  %v568_v61 = vshrl.u32 %v2695_v1, 16 }
  0x27   : > { %1054 = vrot.lane.b32.xlu1 %v2191_v46, %s2599_s8  ;;  %v357_v63 = vrot.slane %v355_v55, 5  ;;  %v363_v5 = vrot.slane %v361_v56, 5  ;;  %v367_v6 = vrot.slane %v365_v57, 4  ;;  %v571_v7 = vshll.u32 %v2695_v1, 16  ;;  %v2805_v55 = vld [vmem:[%s2688_s7 + $0x94] sm:$0xf] }
  0x28   : > { %v551_v10 = vrot.slane %v550_v58, 4  ;;  %v561_v11 = vrot.slane %v560_v59, 4  ;;  %v373_v12 = vrot.slane %v371_v60, 5  ;;  %v570_v13 = vrot.slane %v568_v61, 4 }
  0x29   : > { %v358_v14 = vor.u32 %v357_v63, %v354_v54  ;;  %v368_v15 = vor.u32 %v367_v6, %v363_v5  ;;  %v573_v16 = vrot.slane %v571_v7, 5  ;;  %v577_v18 = vshll.u32 %v2698_v2, 16 }
  0x2a   : > { %v556_v21 = vsel %vm2760_vm5, %v551_v10, %v555_v52  ;;  %v566_v23 = vsel %vm2760_vm5, %v561_v11, %v565_v48  ;;  %v581_v24 = vshrl.u32 %v2698_v2, 16  ;;  %v589_v1 = vrot.slane %v587_v4, 5  ;;  %v2813_v10 = vld [vmem:[%s2688_s7 + $0x98] sm:$0x1] }
  0x2b   : > { %v2182_v25 = vcombine.low %v556_v21, %v566_v23  ;;  %v359_v26 = vrot.slane %v358_v14, 4  ;;  %v369_v27 = vrot.slane %v368_v15, 4  ;;  %v574_v28 = vor.u32 %v573_v16, %v570_v13 }
  0x2c   : > { %v579_v29 = vrot.slane %v577_v18, 5  ;;  %v583_v30 = vrot.slane %v581_v24, 4  ;;  %v376_v31 = vshrl.u32 %v2720_v17, 16  ;;  %v379_v32 = vshll.u32 %v2720_v17, 16  ;;  %v2785_v17 = vld [vmem:[%s2688_s7 + $0x88] sm:$0xf] }
  0x2d   : > { %988 = vrot.lane.b32.xlu0 %v2182_v25, %s2600_s9  ;;  %v364_v2 = vsel %vm2760_vm5, %v359_v26, %v363_v5  ;;  %v374_v3 = vsel %vm2760_vm5, %v369_v27, %v373_v12  ;;  %v575_v4 = vrot.slane %v574_v28, 4  ;;  %v385_v33 = vshll.u32 %v2723_v19, 16  ;;  %v2824_v28 = vld [vmem:[%s2688_s7 + $0x24] sm:$0xf] }
  0x2e   : > { %v2174_v35 = vcombine.low %v364_v2, %v374_v3  ;;  %v584_v36 = vor.u32 %v583_v30, %v579_v29  ;;  %v378_v37 = vrot.slane %v376_v31, 4  ;;  %v381_v38 = vrot.slane %v379_v32, 5  ;;  %v2831_v2 = vld [vmem:[%s2688_s7 + $0x28] sm:$0xf] }
  0x2f   : > { %v580_v39 = vsel %vm2760_vm5, %v575_v4, %v579_v29  ;;  %v387_v40 = vrot.slane %v385_v33, 5  ;;  %v389_v41 = vshrl.u32 %v2723_v19, 16  ;;  %v395_v42 = vshll.u32 %v2726_v20, 16  ;;  %v2800_v19 = vld [vmem:[%s2688_s7 + $0x90] sm:$0xf] }
  0x30   : > { %972 = vrot.lane.b32.xlu1 %v2174_v35, %s2600_s9  ;;  %v585_v43 = vrot.slane %v584_v36, 4  ;;  %v382_v44 = vor.u32 %v381_v38, %v378_v37  ;;  %v592_v46 = vshrl.u32 %v2782_v34, 16  ;;  %v595_v47 = vshll.u32 %v2782_v34, 16  ;;  %v2836_v36 = vld [vmem:[%s2688_s7 + $0x2c] sm:$0x1] }
  0x31   : > { %v391_v48 = vrot.slane %v389_v41, 4  ;;  %v397_v49 = vrot.slane %v395_v42, 5  ;;  %v601_v50 = vshll.u32 %v2785_v17, 16  ;;  %v605_v51 = vshrl.u32 %v2785_v17, 16 }
  0x32   : > { %v590_v20 = vsel %vm2760_vm5, %v585_v43, %v589_v1  ;;  %v383_v52 = vrot.slane %v382_v44, 4  ;;  %v594_v53 = vrot.slane %v592_v46, 4  ;;  %v597_v54 = vrot.slane %v595_v47, 5 }
  0x33   : > { %v2183_v56 = vcombine.low %v580_v39, %v590_v20  ;;  %v392_v57 = vor.u32 %v391_v48, %v387_v40  ;;  %v603_v58 = vrot.slane %v601_v50, 5  ;;  %v607_v59 = vrot.slane %v605_v51, 4 }
  0x34   : > { %v388_v60 = vsel %vm2760_vm5, %v383_v52, %v387_v40  ;;  %v598_v61 = vor.u32 %v597_v54, %v594_v53  ;;  %v611_v63 = vshll.u32 %v2793_v45, 16  ;;  %v616_v5 = vshrl.u32 %v2800_v19, 16  ;;  %v2856_v53 = vld [vmem:[%s2688_s7 + $0x34] sm:$0xf] }
  0x35   : > { %990 = vrot.lane.b32.xlu0 %v2183_v56, %s2600_s9  ;;  %v393_v6 = vrot.slane %v392_v57, 4  ;;  %v608_v7 = vor.u32 %v607_v59, %v603_v58  ;;  %v619_v11 = vshll.u32 %v2800_v19, 16  ;;  %v625_v12 = vshll.u32 %v2805_v55, 16 }
  0x36   : > { %v599_v13 = vrot.slane %v598_v61, 4  ;;  %v613_v14 = vrot.slane %v611_v63, 5  ;;  %v618_v15 = vrot.slane %v616_v5, 4  ;;  %v629_v16 = vshrl.u32 %v2805_v55, 16 }
  0x37   : > { %v398_v18 = vsel %vm2760_vm5, %v393_v6, %v397_v49  ;;  %v609_v21 = vrot.slane %v608_v7, 4  ;;  %v621_v23 = vrot.slane %v619_v11, 5  ;;  %v627_v24 = vrot.slane %v625_v12, 5  ;;  %v2851_v49 = vld [vmem:[%s2688_s7 + $0x30] sm:$0xf] }
  0x38   : > { %v2175_v1 = vcombine.low %v388_v60, %v398_v18  ;;  %v604_v25 = vsel %vm2760_vm5, %v599_v13, %v603_v58  ;;  %v631_v26 = vrot.slane %v629_v16, 4  ;;  %v635_v27 = vshll.u32 %v2813_v10, 16  ;;  %v284_v6 = vld [vmem:[%s2688_s7 + $0x38] sm:$0x1] }
  0x39   : > { %v614_v29 = vsel %vm2760_vm5, %v609_v21, %v613_v14  ;;  %v622_v30 = vor.u32 %v621_v23, %v618_v15  ;;  %v2152_v31 = vrot.slane %v2782_v34, 9  ;;  %v841_v32 = vrot.slane %v2785_v17, 5 }
  0x3a   : > { %974 = vrot.lane.b32.xlu1 %v2175_v1, %s2600_s9  ;;  %v2184_v3 = vcombine.low %v604_v25, %v614_v29  ;;  %v632_v4 = vor.u32 %v631_v26, %v627_v24  ;;  %v637_v33 = vrot.slane %v635_v27, 5  ;;  %v844_v35 = vrot.slane %v2793_v45, 5 }
  0x3b   : > { %v623_v37 = vrot.slane %v622_v30, 4  ;;  %v842_v38 = vsel %vm2690_vm2, %v2152_v31, %v841_v32  ;;  %v843_v39 = vrot.slane %v841_v32, 4  ;;  %v400_v40 = vshrl.u32 %v2824_v28, 16  ;;  %v2878_v32 = vld [vmem:[%s2688_s7 + $0x9c] sm:$0xf] }
  0x3c   : > { %992 = vrot.lane.b32.xlu0 %v2184_v3, %s2600_s9  ;;  %v633_v41 = vrot.slane %v632_v4, 4  ;;  %v403_v42 = vshll.u32 %v2824_v28, 16  ;;  %v409_v43 = vshll.u32 %v2831_v2, 16  ;;  %v413_v44 = vshrl.u32 %v2831_v2, 16 }
  0x3d   : > { %v628_v45 = vsel %vm2760_vm5, %v623_v37, %v627_v24  ;;  %v845_v46 = vsel %vm2690_vm2, %v843_v39, %v844_v35  ;;  %v402_v47 = vrot.slane %v400_v40, 4  ;;  %v419_v48 = vshll.u32 %v2836_v36, 16 }
  0x3e   : > { %v638_v50 = vsel %vm2760_vm5, %v633_v41, %v637_v33  ;;  %v2200_v51 = vcombine.low %v842_v38, %v845_v46  ;;  %v405_v20 = vrot.slane %v403_v42, 5  ;;  %v411_v52 = vrot.slane %v409_v43, 5 }
  0x3f   : > { %v2185_v54 = vcombine.low %v628_v45, %v638_v50  ;;  %v415_v56 = vrot.slane %v413_v44, 4  ;;  %v421_v57 = vrot.slane %v419_v48, 5  ;;  %v2153_v58 = vrot.slane %v2800_v19, 9  ;;  %v2889_v44 = vld [vmem:[%s2688_s7 + $0xa0] sm:$0xf] }
  0x40   : > { %1072 = vrot.lane.b32.xlu0 %v2200_v51, %s2599_s8  ;;  %v406_v59 = vor.u32 %v405_v20, %v402_v47  ;;  %v848_v60 = vrot.slane %v2805_v55, 5  ;;  %v851_v61 = vrot.slane %v2813_v10, 5  ;;  %v424_v63 = vshrl.u32 %v2851_v49, 16  ;;  %v311_v50 = vld [vmem:[%s2688_s7 + $0xa4] sm:$0x1] }
  0x41   : > { %994 = vrot.lane.b32.xlu1 %v2185_v54, %s2600_s9  ;;  %v416_v5 = vor.u32 %v415_v56, %v411_v52  ;;  %v427_v7 = vshll.u32 %v2851_v49, 16  ;;  %v433_v11 = vshll.u32 %v2856_v53, 16  ;;  %v437_v12 = vshrl.u32 %v2856_v53, 16  ;;  %v2900_v51 = vld [vmem:[%s2688_s7 + $0xa8] sm:$0xf] }
  0x42   : > { %v407_v13 = vrot.slane %v406_v59, 4  ;;  %v849_v14 = vsel %vm2690_vm2, %v2153_v58, %v848_v60  ;;  %v850_v15 = vrot.slane %v848_v60, 4  ;;  %v426_v16 = vrot.slane %v424_v63, 4 }
  0x43   : > { %v417_v10 = vrot.slane %v416_v5, 4  ;;  %v429_v18 = vrot.slane %v427_v7, 5  ;;  %v435_v21 = vrot.slane %v433_v11, 5  ;;  %v439_v23 = vrot.slane %v437_v12, 4  ;;  %v2914_v7 = vld [vmem:[%s2688_s7 + $0xb0] sm:$0x1] }
  0x44   : > { %v412_v24 = vsel %vm2760_vm5, %v407_v13, %v411_v52  ;;  %v852_v1 = vsel %vm2690_vm2, %v850_v15, %v851_v61  ;;  %v443_v25 = vshll.u32 %v284_v6, 16  ;;  %v2144_v26 = vrot.slane %v2824_v28, 9 }
  0x45   : > { %v422_v27 = vsel %vm2760_vm5, %v417_v10, %v421_v57  ;;  %v2201_v29 = vcombine.low %v849_v14, %v852_v1  ;;  %v430_v30 = vor.u32 %v429_v18, %v426_v16  ;;  %v440_v31 = vor.u32 %v439_v23, %v435_v21  ;;  %v2906_v57 = vld [vmem:[%s2688_s7 + $0xac] sm:$0xf] }
  0x46   : > { %v2176_v3 = vcombine.low %v412_v24, %v422_v27  ;;  %v445_v4 = vrot.slane %v443_v25, 5  ;;  %v785_v33 = vrot.slane %v2831_v2, 5  ;;  %v788_v35 = vrot.slane %v2836_v36, 5 }
  0x47   : > { %1074 = vrot.lane.b32.xlu0 %v2201_v29, %s2599_s8  ;;  %v431_v37 = vrot.slane %v430_v30, 4  ;;  %v441_v38 = vrot.slane %v440_v31, 4  ;;  %v2145_v39 = vrot.slane %v2851_v49, 9  ;;  %v792_v40 = vrot.slane %v2856_v53, 5  ;;  %v2926_v31 = vld [vmem:[%s2688_s7 + $0x3c] sm:$0xf] }
  0x48   : > { %976 = vrot.lane.b32.xlu1 %v2176_v3, %s2600_s9  ;;  %v786_v41 = vsel %vm2690_vm2, %v2144_v26, %v785_v33  ;;  %v787_v42 = vrot.slane %v785_v33, 4  ;;  %v795_v43 = vrot.slane %v284_v6, 5  ;;  %v640_v36 = vshrl.u32 %v2878_v32, 16 }
  0x49   : > { %v436_v45 = vsel %vm2760_vm5, %v431_v37, %v435_v21  ;;  %v446_v46 = vsel %vm2760_vm5, %v441_v38, %v445_v4  ;;  %v793_v47 = vsel %vm2690_vm2, %v2145_v39, %v792_v40  ;;  %v794_v48 = vrot.slane %v792_v40, 4  ;;  %v2929_v37 = vld [vmem:[%s2688_s7 + $0x40] sm:$0xf] }
  0x4a   : > { %v2177_v20 = vcombine.low %v436_v45, %v446_v46  ;;  %v789_v52 = vsel %vm2690_vm2, %v787_v42, %v788_v35  ;;  %v642_v54 = vrot.slane %v640_v36, 4  ;;  %v643_v56 = vshll.u32 %v2878_v32, 16  ;;  %v2938_v36 = vld [vmem:[%s2688_s7 + $0x44] sm:$0x1] }
  0x4b   : > { %v2192_v58 = vcombine.low %v786_v41, %v789_v52  ;;  %v796_v59 = vsel %vm2690_vm2, %v794_v48, %v795_v43  ;;  %v649_v60 = vshll.u32 %v2889_v44, 16  ;;  %v653_v61 = vshrl.u32 %v2889_v44, 16 }
  0x4c   : > { %978 = vrot.lane.b32.xlu1 %v2177_v20, %s2600_s9  ;;  %v2193_v63 = vcombine.low %v793_v47, %v796_v59  ;;  %v645_v5 = vrot.slane %v643_v56, 5  ;;  %v659_v6 = vshll.u32 %v311_v50, 16  ;;  %v664_v11 = vshrl.u32 %v2900_v51, 16  ;;  %v2948_v59 = vld [vmem:[%s2688_s7 + $0x48] sm:$0xf] }
  0x4d   : > { %1056 = vrot.lane.b32.xlu0 %v2192_v58, %s2599_s8  ;;  %v651_v12 = vrot.slane %v649_v60, 5  ;;  %v655_v13 = vrot.slane %v653_v61, 4  ;;  %v667_v14 = vshll.u32 %v2900_v51, 16  ;;  %v673_v15 = vshll.u32 %v2906_v57, 16 }
  0x4e   : > { %v646_v16 = vor.u32 %v645_v5, %v642_v54  ;;  %v661_v10 = vrot.slane %v659_v6, 5  ;;  %v666_v18 = vrot.slane %v664_v11, 4  ;;  %v677_v21 = vshrl.u32 %v2906_v57, 16 }
  0x4f   : > { %v656_v23 = vor.u32 %v655_v13, %v651_v12  ;;  %v669_v24 = vrot.slane %v667_v14, 5  ;;  %v675_v1 = vrot.slane %v673_v15, 5  ;;  %v683_v25 = vshll.u32 %v2914_v7, 16  ;;  %v2958_v14 = vld [vmem:[%s2688_s7 + $0x4c] sm:$0xf] }
  0x50   : > { %1058 = vrot.lane.b32.xlu1 %v2193_v63, %s2599_s8  ;;  %v647_v26 = vrot.slane %v646_v16, 4  ;;  %v679_v27 = vrot.slane %v677_v21, 4  ;;  %v2154_v29 = vrot.slane %v2878_v32, 9  ;;  %v855_v30 = vrot.slane %v2889_v44, 5 }
  0x51   : > { %v657_v3 = vrot.slane %v656_v23, 4  ;;  %v670_v4 = vor.u32 %v669_v24, %v666_v18  ;;  %v685_v33 = vrot.slane %v683_v25, 5  ;;  %v858_v35 = vrot.slane %v311_v50, 5  ;;  %v290_v18 = vld [vmem:[%s2688_s7 + $0x50] sm:$0x1] }
  0x52   : > { %v652_v38 = vsel %vm2760_vm5, %v647_v26, %v651_v12  ;;  %v680_v39 = vor.u32 %v679_v27, %v675_v1  ;;  %v856_v40 = vsel %vm2690_vm2, %v2154_v29, %v855_v30  ;;  %v857_v41 = vrot.slane %v855_v30, 4 }
  0x53   : > { %v662_v42 = vsel %vm2760_vm5, %v657_v3, %v661_v10  ;;  %v671_v43 = vrot.slane %v670_v4, 4  ;;  %v448_v45 = vshrl.u32 %v2926_v31, 16  ;;  %v451_v46 = vshll.u32 %v2926_v31, 16 }
  0x54   : > { %v2186_v47 = vcombine.low %v652_v38, %v662_v42  ;;  %v681_v48 = vrot.slane %v680_v39, 4  ;;  %v859_v50 = vsel %vm2690_vm2, %v857_v41, %v858_v35  ;;  %v457_v20 = vshll.u32 %v2929_v37, 16 }
  0x55   : > { %v676_v52 = vsel %vm2760_vm5, %v671_v43, %v675_v1  ;;  %v2202_v54 = vcombine.low %v856_v40, %v859_v50  ;;  %v450_v56 = vrot.slane %v448_v45, 4  ;;  %v453_v58 = vrot.slane %v451_v46, 5  ;;  %v2977_v46 = vld [vmem:[%s2688_s7 + $0xb4] sm:$0xf] }
  0x56   : > { %996 = vrot.lane.b32.xlu0 %v2186_v47, %s2600_s9  ;;  %v686_v60 = vsel %vm2760_vm5, %v681_v48, %v685_v33  ;;  %v459_v61 = vrot.slane %v457_v20, 5  ;;  %v461_v63 = vshrl.u32 %v2929_v37, 16  ;;  %v467_v5 = vshll.u32 %v2938_v36, 16 }
  0x57   : > { %v2187_v6 = vcombine.low %v676_v52, %v686_v60  ;;  %v454_v11 = vor.u32 %v453_v58, %v450_v56  ;;  %v2155_v12 = vrot.slane %v2900_v51, 9  ;;  %v862_v13 = vrot.slane %v2906_v57, 5  ;;  %v2985_v52 = vld [vmem:[%s2688_s7 + $0xb8] sm:$0xf] }
  0x58   : > { %v463_v15 = vrot.slane %v461_v63, 4  ;;  %v469_v16 = vrot.slane %v467_v5, 5  ;;  %v865_v10 = vrot.slane %v2914_v7, 5  ;;  %v472_v21 = vshrl.u32 %v2948_v59, 16 }
  0x59   : > { %998 = vrot.lane.b32.xlu1 %v2187_v6, %s2600_s9  ;;  %v455_v23 = vrot.slane %v454_v11, 4  ;;  %v863_v24 = vsel %vm2690_vm2, %v2155_v12, %v862_v13  ;;  %v864_v1 = vrot.slane %v862_v13, 4  ;;  %v475_v25 = vshll.u32 %v2948_v59, 16  ;;  %v317_v12 = vld [vmem:[%s2688_s7 + $0xbc] sm:$0x1] }
  0x5a   : > { %1076 = vrot.lane.b32.xlu0 %v2202_v54, %s2599_s8  ;;  %v464_v26 = vor.u32 %v463_v15, %v459_v61  ;;  %v474_v27 = vrot.slane %v472_v21, 4  ;;  %v481_v29 = vshll.u32 %v2958_v14, 16  ;;  %v485_v7 = vshrl.u32 %v2958_v14, 16 }
  0x5b   : > { %v460_v30 = vsel %vm2760_vm5, %v455_v23, %v459_v61  ;;  %v866_v3 = vsel %vm2690_vm2, %v864_v1, %v865_v10  ;;  %v477_v4 = vrot.slane %v475_v25, 5  ;;  %v491_v33 = vshll.u32 %v290_v18, 16 }
  0x5c   : > { %v465_v35 = vrot.slane %v464_v26, 4  ;;  %v2203_v38 = vcombine.low %v863_v24, %v866_v3  ;;  %v483_v39 = vrot.slane %v481_v29, 5  ;;  %v487_v40 = vrot.slane %v485_v7, 4  ;;  %v3004_v26 = vld [vmem:[%s2688_s7 + $0xc0] sm:$0xf] }
  0x5d   : > { %v478_v41 = vor.u32 %v477_v4, %v474_v27  ;;  %v493_v42 = vrot.slane %v491_v33, 5  ;;  %v2146_v43 = vrot.slane %v2926_v31, 9  ;;  %v799_v45 = vrot.slane %v2929_v37, 5  ;;  %v3012_v3 = vld [vmem:[%s2688_s7 + $0xc4] sm:$0xf] }
  0x5e   : > { %v470_v47 = vsel %vm2760_vm5, %v465_v35, %v469_v16  ;;  %1078 = vrot.lane.b32.xlu0 %v2203_v38, %s2599_s8  ;;  %v488_v48 = vor.u32 %v487_v40, %v483_v39  ;;  %v802_v50 = vrot.slane %v2938_v36, 5  ;;  %v2147_v20 = vrot.slane %v2948_v59, 9 }
  0x5f   : > { %v2178_v54 = vcombine.low %v460_v30, %v470_v47  ;;  %v479_v56 = vrot.slane %v478_v41, 4  ;;  %v800_v58 = vsel %vm2690_vm2, %v2146_v43, %v799_v45  ;;  %v801_v60 = vrot.slane %v799_v45, 4  ;;  %v3017_v41 = vld [vmem:[%s2688_s7 + $0xc8] sm:$0x1] }
  0x60   : > { %v489_v61 = vrot.slane %v488_v48, 4  ;;  %v806_v63 = vrot.slane %v2958_v14, 5  ;;  %v809_v5 = vrot.slane %v290_v18, 5  ;;  %v688_v6 = vshrl.u32 %v2977_v46, 16 }
  0x61   : > { %980 = vrot.lane.b32.xlu1 %v2178_v54, %s2600_s9  ;;  %v484_v36 = vsel %vm2760_vm5, %v479_v56, %v483_v39  ;;  %v803_v11 = vsel %vm2690_vm2, %v801_v60, %v802_v50  ;;  %v691_v13 = vshll.u32 %v2977_v46, 16  ;;  %v697_v15 = vshll.u32 %v2985_v52, 16 }
  0x62   : > { %v494_v16 = vsel %vm2760_vm5, %v489_v61, %v493_v42  ;;  %v2194_v10 = vcombine.low %v800_v58, %v803_v11  ;;  %v807_v18 = vsel %vm2690_vm2, %v2147_v20, %v806_v63  ;;  %v808_v21 = vrot.slane %v806_v63, 4  ;;  %v3025_v20 = vld [vmem:[%s2688_s7 + $0x54] sm:$0xf]  ;;  %v3029_v61 = vld [vmem:[%s2688_s7 + $0x58] sm:$0xf] }
  0x63   : > { %v2179_v23 = vcombine.low %v484_v36, %v494_v16  ;;  %v690_v24 = vrot.slane %v688_v6, 4  ;;  %v693_v1 = vrot.slane %v691_v13, 5  ;;  %v699_v25 = vrot.slane %v697_v15, 5 }
  0x64   : > { %1060 = vrot.lane.b32.xlu0 %v2194_v10, %s2599_s8  ;;  %v810_v27 = vsel %vm2690_vm2, %v808_v21, %v809_v5  ;;  %v701_v29 = vshrl.u32 %v2985_v52, 16  ;;  %v707_v7 = vshll.u32 %v317_v12, 16  ;;  %v2156_v30 = vrot.slane %v2977_v46, 9  ;;  %v3038_v10 = vld [vmem:[%s2688_s7 + $0x5c] sm:$0x1] }
  0x65   : > { %982 = vrot.lane.b32.xlu1 %v2179_v23, %s2600_s9  ;;  %v2195_v4 = vcombine.low %v807_v18, %v810_v27  ;;  %v694_v33 = vor.u32 %v693_v1, %v690_v24  ;;  %v869_v35 = vrot.slane %v2985_v52, 5  ;;  %v872_v38 = vrot.slane %v317_v12, 5 }
  0x66   : > { %v703_v39 = vrot.slane %v701_v29, 4  ;;  %v709_v40 = vrot.slane %v707_v7, 5  ;;  %v1167_v42 = vshrl.u32 %v3004_v26, 16  ;;  %v1170_v43 = vshll.u32 %v3004_v26, 16 }
  0x67   : > { %v695_v45 = vrot.slane %v694_v33, 4  ;;  %v870_v47 = vsel %vm2690_vm2, %v2156_v30, %v869_v35  ;;  %v871_v48 = vrot.slane %v869_v35, 4  ;;  %v1176_v50 = vshll.u32 %v3012_v3, 16  ;;  %v3048_v33 = vld [vmem:[%s2688_s7 + $0x60] sm:$0xf] }
  0x68   : > { %v704_v54 = vor.u32 %v703_v39, %v699_v25  ;;  %v1169_v56 = vrot.slane %v1167_v42, 4  ;;  %v1172_v58 = vrot.slane %v1170_v43, 5  ;;  %v1180_v60 = vshrl.u32 %v3012_v3, 16 }
  0x69   : > { %1062 = vrot.lane.b32.xlu1 %v2195_v4, %s2599_s8  ;;  %v700_v63 = vsel %vm2760_vm5, %v695_v45, %v699_v25  ;;  %v873_v5 = vsel %vm2690_vm2, %v871_v48, %v872_v38  ;;  %v1178_v6 = vrot.slane %v1176_v50, 5  ;;  %v1186_v36 = vshll.u32 %v3017_v41, 16  ;;  %v3058_v48 = vld [vmem:[%s2688_s7 + $0x64] sm:$0xf] }
  0x6a   : > { %v705_v11 = vrot.slane %v704_v54, 4  ;;  %v2204_v12 = vcombine.low %v870_v47, %v873_v5  ;;  %v1173_v13 = vor.u32 %v1172_v58, %v1169_v56  ;;  %v1182_v15 = vrot.slane %v1180_v60, 4  ;;  %v296_v58 = vld [vmem:[%s2688_s7 + $0x68] sm:$0x1] }
  0x6b   : > { %v1188_v16 = vrot.slane %v1186_v36, 5  ;;  %v496_v18 = vshrl.u32 %v3025_v20, 16  ;;  %v499_v21 = vshll.u32 %v3025_v20, 16  ;;  %v505_v23 = vshll.u32 %v3029_v61, 16 }
  0x6c   : > { %v710_v24 = vsel %vm2760_vm5, %v705_v11, %v709_v40  ;;  %v1174_v1 = vrot.slane %v1173_v13, 4  ;;  %v1183_v25 = vor.u32 %v1182_v15, %v1178_v6  ;;  %v509_v27 = vshrl.u32 %v3029_v61, 16 }
  0x6d   : > { %v2188_v29 = vcombine.low %v700_v63, %v710_v24  ;;  %1080 = vrot.lane.b32.xlu1 %v2204_v12, %s2599_s8  ;;  %v498_v7 = vrot.slane %v496_v18, 4  ;;  %v501_v30 = vrot.slane %v499_v21, 5  ;;  %v507_v4 = vrot.slane %v505_v23, 5 }
  0x6e   : > { %v1179_v35 = vsel %vm2760_vm5, %v1174_v1, %v1178_v6  ;;  %v1184_v38 = vrot.slane %v1183_v25, 4  ;;  %v511_v39 = vrot.slane %v509_v27, 4  ;;  %v515_v40 = vshll.u32 %v3038_v10, 16  ;;  %v3077_v27 = vld [vmem:[%s2688_s7] sm:$0xf] }
  0x6f   : > { %1000 = vrot.lane.b32.xlu0 %v2188_v29, %s2600_s9  ;;  %v502_v42 = vor.u32 %v501_v30, %v498_v7  ;;  %v2205_v43 = vrot.slane %v3004_v26, 9  ;;  %v1195_v45 = vrot.slane %v3012_v3, 5  ;;  %v1198_v47 = vrot.slane %v3017_v41, 5 }
  0x70   : > { %v1189_v50 = vsel %vm2760_vm5, %v1184_v38, %v1188_v16  ;;  %v512_v54 = vor.u32 %v511_v39, %v507_v4  ;;  %v517_v56 = vrot.slane %v515_v40, 5  ;;  %v520_v60 = vshrl.u32 %v3048_v33, 16 }
  0x71   : > { %v2207_v63 = vcombine.low %v1179_v35, %v1189_v50  ;;  %v503_v5 = vrot.slane %v502_v42, 4  ;;  %v1196_v6 = vsel %vm2690_vm2, %v2205_v43, %v1195_v45  ;;  %v1197_v36 = vrot.slane %v1195_v45, 4 }
  0x72   : > { %v513_v11 = vrot.slane %v512_v54, 4  ;;  %v522_v12 = vrot.slane %v520_v60, 4  ;;  %v523_v41 = vshll.u32 %v3048_v33, 16  ;;  %v529_v13 = vshll.u32 %v3058_v48, 16 }
  0x73   : > { %1206 = vrot.lane.b32.xlu0 %v2207_v63, %s2600_s9  ;;  %v508_v15 = vsel %vm2760_vm5, %v503_v5, %v507_v4  ;;  %v1199_v16 = vsel %vm2690_vm2, %v1197_v36, %v1198_v47  ;;  %v533_v18 = vshrl.u32 %v3058_v48, 16  ;;  %v539_v21 = vshll.u32 %v296_v58, 16  ;;  %v3087_v47 = vld [vmem:[%s2688_s7 + $0x4] sm:$0xf] }
  0x74   : > { %v518_v23 = vsel %vm2760_vm5, %v513_v11, %v517_v56  ;;  %v2208_v24 = vcombine.low %v1196_v6, %v1199_v16  ;;  %v525_v1 = vrot.slane %v523_v41, 5  ;;  %v531_v25 = vrot.slane %v529_v13, 5 }
  0x75   : > { %v2180_v29 = vcombine.low %v508_v15, %v518_v23  ;;  %v535_v7 = vrot.slane %v533_v18, 4  ;;  %v541_v30 = vrot.slane %v539_v21, 5  ;;  %v2148_v4 = vrot.slane %v3025_v20, 9 }
  0x76   : > { %v526_v35 = vor.u32 %v525_v1, %v522_v12  ;;  %v813_v38 = vrot.slane %v3029_v61, 5  ;;  %v816_v39 = vrot.slane %v3038_v10, 5  ;;  %v2149_v40 = vrot.slane %v3048_v33, 9  ;;  %v272_v12 = vld [vmem:[%s2688_s7 + $0x8] sm:$0x1] }
  0x77   : > { %984 = vrot.lane.b32.xlu1 %v2180_v29, %s2600_s9  ;;  %1211 = vrot.lane.b32.xlu0 %v2208_v24, %s2599_s8  ;;  %v536_v42 = vor.u32 %v535_v7, %v531_v25  ;;  %v820_v43 = vrot.slane %v3058_v48, 5  ;;  %v823_v45 = vrot.slane %v296_v58, 5  ;;  %v328_v50 = vshrl.u32 %v3077_v27, 16 }
  0x78   : > { %v527_v54 = vrot.slane %v526_v35, 4  ;;  %v814_v56 = vsel %vm2690_vm2, %v2148_v4, %v813_v38  ;;  %v815_v10 = vrot.slane %v813_v38, 4  ;;  %v331_v60 = vshll.u32 %v3077_v27, 16  ;;  %v3113_v35 = vld [vmem:[%s2688_s7 + $0xd0] sm:$0xf] }
  0x79   : > { %v537_v63 = vrot.slane %v536_v42, 4  ;;  %v821_v5 = vsel %vm2690_vm2, %v2149_v40, %v820_v43  ;;  %v822_v6 = vrot.slane %v820_v43, 4  ;;  %v330_v36 = vrot.slane %v328_v50, 4  ;;  %v323_v42 = vld [vmem:[%s2688_s7 + $0xd4] sm:$0x1] }
  0x7a   : > { %v532_v58 = vsel %vm2760_vm5, %v527_v54, %v531_v25  ;;  %v817_v11 = vsel %vm2690_vm2, %v815_v10, %v816_v39  ;;  %v333_v41 = vrot.slane %v331_v60, 5  ;;  %v337_v13 = vshll.u32 %v3087_v47, 16  ;;  %v3107_v25 = vld [vmem:[%s2688_s7 + $0xcc] sm:$0xf] }
  0x7b   : > { %v542_v15 = vsel %vm2760_vm5, %v537_v63, %v541_v30  ;;  %v2196_v16 = vcombine.low %v814_v56, %v817_v11  ;;  %v824_v18 = vsel %vm2690_vm2, %v822_v6, %v823_v45  ;;  %v341_v21 = vshrl.u32 %v3087_v47, 16 }
  0x7c   : > { %v2181_v23 = vcombine.low %v532_v58, %v542_v15  ;;  %v334_v24 = vor.u32 %v333_v41, %v330_v36  ;;  %v339_v1 = vrot.slane %v337_v13, 5  ;;  %v347_v7 = vshll.u32 %v272_v12, 16 }
  0x7d   : > { %1064 = vrot.lane.b32.xlu0 %v2196_v16, %s2599_s8  ;;  %v343_v29 = vrot.slane %v341_v21, 4  ;;  %v2141_v4 = vrot.slane %v3077_v27, 9  ;;  %v764_v30 = vrot.slane %v3087_v47, 5  ;;  %v2197_v38 = vcombine.low %v821_v5, %v824_v18  ;;  %v2496_v5 = vld [vmem:[%s3591_s1 + $0x8] sm:$0x3f]  }
  0x7e   : > { %986 = vrot.lane.b32.xlu1 %v2181_v23, %s2600_s9  ;;  %v335_v39 = vrot.slane %v334_v24, 4  ;;  %v767_v40 = vrot.slane %v272_v12, 5  ;;  %v349_v45 = vrot.slane %v347_v7, 5  ;;  %v1596_v10 = vshrl.u32 %v3107_v25, 16  ;;  %2431 = vmatprep.subr.msk.bf16.mxu0 %vm1259_vm6, %v2496_v5 }
  0x7f   : > { %v344_v43 = vor.u32 %v343_v29, %v339_v1  ;;  %v765_v50 = vsel %vm2690_vm2, %v2141_v4, %v764_v30  ;;  %v766_v54 = vrot.slane %v764_v30, 4  ;;  %v1599_v60 = vshll.u32 %v3107_v25, 16  ;;  %2432 = vmatprep.subr.msk.bf16.mxu1 %vm1259_vm6, %v2496_v5 }
  0x80   : > { %v340_v56 = vsel %vm2760_vm5, %v335_v39, %v339_v1  ;;  %v1605_v63 = vshll.u32 %v3113_v35, 16  ;;  %v1609_v58 = vshrl.u32 %v3113_v35, 16  ;;  %v1615_v11 = vshll.u32 %v323_v42, 16  ;;  %v2505_v1 = vld [vmem:[%s3591_s1] sm:$0x3f]  }
  0x81   : > { %v345_v6 = vrot.slane %v344_v43, 4  ;;  %v768_v36 = vsel %vm2690_vm2, %v766_v54, %v767_v40  ;;  %v1598_v41 = vrot.slane %v1596_v10, 4  ;;  %v1601_v13 = vrot.slane %v1599_v60, 5 }
  0x82   : > { %1066 = vrot.lane.b32.xlu1 %v2197_v38, %s2599_s8  ;;  %v2189_v12 = vcombine.low %v765_v50, %v768_v36  ;;  %v1607_v15 = vrot.slane %v1605_v63, 5  ;;  %v1611_v18 = vrot.slane %v1609_v58, 4  ;;  %v1617_v24 = vrot.slane %v1615_v11, 5  ;;  %v2507_v38 = vld [vmem:[%s3591_s1 + $0x10] sm:$0x3f]  }
  0x83   : > { %v350_v16 = vsel %vm2760_vm5, %v345_v6, %v349_v45  ;;  %v1602_v23 = vor.u32 %v1601_v13, %v1598_v41  ;;  %v2245_v7 = vrot.slane %v3107_v25, 9  ;;  %v1624_v4 = vrot.slane %v3113_v35, 5 }
  0x84   : > { %v2173_v21 = vcombine.low %v340_v56, %v350_v16  ;;  %v1612_v29 = vor.u32 %v1611_v18, %v1607_v15  ;;  %v1627_v30 = vrot.slane %v323_v42, 5  ;;  %v1261_v40 = vsel %vm1259_vm6, %v2496_v5, 0  ;;  %v2515_v18 = vld [vmem:[%s2688_s7 + $0xc] sm:$0xf] }
  0x85   : > { %v1603_v39 = vrot.slane %v1602_v23, 4  ;;  %v1625_v45 = vsel %vm2690_vm2, %v2245_v7, %v1624_v4  ;;  %v1626_v50 = vrot.slane %v1624_v4, 4  ;;  %2328 = vmatpush3.bf16.msra.mxu0 %v1261_v40  ;;  %2430 = vmatpush3.bf16.msra.mxu1 %v1261_v40  ;;  %v2171_v10 = vcombine.low %v2900_v51, %v2906_v57  ;;  %v2518_v40 = vld [vmem:[%s2688_s7 + $0x7c] sm:$0xf] }
  0x86   : > { %970 = vrot.lane.b32.xlu0 %v2173_v21, %s2600_s9  ;;  %1050 = vrot.lane.b32.xlu1 %v2189_v12, %s2599_s8  ;;  %v1613_v43 = vrot.slane %v1612_v29, 4  ;;  %v2162_v5 = vcombine.low %v2926_v31, %v2929_v37  ;;  %v2163_v6 = vcombine.low %v2948_v59, %v2958_v14  ;;  %v2172_v62 = vcombine.low %v2977_v46, %v2985_v52  ;;  %v2516_v21 = vld [vmem:[%s2688_s7 + $0x10] sm:$0xf] }
  0x87   : > { %v1608_v42 = vsel %vm2760_vm5, %v1603_v39, %v1607_v15  ;;  %2433 = vmatprep.subr.msk.bf16.mxu1 %vm1259_vm6, %v2505_v1  ;;  %v1628_v56 = vsel %vm2690_vm2, %v1626_v50, %v1627_v30  ;;  %2434 = vmatprep.subr.msk.bf16.mxu0 %vm1259_vm6, %v2507_v38  ;;  %v2206_v0 = vcombine.low %v3004_v26, %v3012_v3  ;;  %v2517_v39 = vld [vmem:[%s2688_s7 + $0x78] sm:$0xf]  ;;  %v2520_v50 = vld [vmem:[%s2688_s7 + $0x1c] sm:$0xf] }
  0x88   : > { %v1618_v54 = vsel %vm2760_vm5, %v1613_v43, %v1617_v24  ;;  %v2248_v63 = vcombine.low %v1625_v45, %v1628_v56  ;;  %v2164_v36 = vcombine.low %v3025_v20, %v3029_v61  ;;  %v2165_v58 = vcombine.low %v3048_v33, %v3058_v48  ;;  %v2519_v45 = vld [vmem:[%s2688_s7 + $0x18] sm:$0xf]  ;;  %s2275_s7 = sshll.u32 %s2589_s18, 12  ;;  %s3544_s18 = scalar_lea.sflag [#allocation3], %s246_s22 }
  0x89   : > { %v2247_v60 = vcombine.low %v1608_v42, %v1618_v54  ;;  %v2157_v11 = vcombine.low %v3077_v27, %v3087_v47  ;;  %v2158_v23 = vcombine.low %v2515_v18, %v2516_v21  ;;  %v2167_v43 = vcombine.low %v2517_v39, %v2518_v40  ;;  %s3536_s12 = scalar_lea.hbm %s3594_s4, %s2275_s7 }
  0x8a   : > { %1640 = vrot.lane.b32.xlu1 %v2248_v63, %s2599_s8  ;;  %v2159_v42 = vcombine.low %v2519_v45, %v2520_v50  ;;  %v1658_v63 = vsel %vm1259_vm6, %v2507_v38, 0  ;;  %v2246_v38 = vcombine.low %v3107_v25, %v3113_v35 }
  0x8b   : > { %1635 = vrot.lane.b32.xlu0 %v2247_v60, %s2600_s9  ;;  %s2013_s9 = sshll.u32 %s3415_s6, 4  ;;  %s3539_s9 = int_to_ptr.vmem [resolvable:$true] %s2013_s9 }
  0x8c   : > { %s2521_s13 = scalar_lea.vmem %s3539_s9, 4096  ;;  %p2528_p1 = scmp.lt.s32.totalorder %s3539_s9, %s2526_s21 }
  0x8d   : > { %p2522_p12 = scmp.ne.s32.totalorder %s3539_s9, %s2521_s13  ;;  %p2529_p2 = scmp.lt.s32.totalorder %s2527_s24, %s2521_s13 }
  0x8f   : > { %p2523_p13 = pnand %p2522_p12, %p2668_p4  ;;  %p2530_p3 = por %p2529_p2, %p2528_p1 }
  0x91   : > { %p2524_p0 = pneg %p2523_p13 }
  0x93   : > { %v1071_v12 = vpop.permute.xlu0 %1070  ;;  %p2531_p5 = pnand %p2530_p3, %p2524_p0 }
  0x95   : > { %v1069_v41 = vpop.permute.xlu1 %1068 }
  0x98   : > { %v1053_v13 = vpop.permute.xlu0 %1052 }
  0x99   : > { %v1055_v15 = vpop.permute.xlu1 %1054 }
  0x9f   : > { %v989_v16 = vpop.permute.xlu0 %988 }
  0xa0   : > { %v1112_v24 = vsel %vm1082_vm7, %v2166_v22, %v989_v16  ;;  %v1432_v22 = vsel %vm1259_vm6, %v2505_v1, 0  ;;  %v2168_v1 = vcombine.low %v2782_v34, %v2785_v17  ;;  %v2169_v34 = vcombine.low %v2800_v19, %v2805_v55 }
  0xa1   : > { %v3181_v29 = vsel %vm1131_vm8, %v1112_v24, %v1069_v41 }
  0xa2   : > { %v973_v7 = vpop.permute.xlu1 %972  ;;  %2345 = vmatprep.mubr.msk.bf16.mxu1 %vm1226_vm9, %v3181_v29 }
  0xa3   : > { %v1088_v4 = vsel %vm1082_vm7, %v2158_v23, %v973_v7  ;;  %v2160_v7 = vcombine.low %v2824_v28, %v2831_v2  ;;  %v2170_v28 = vcombine.low %v2878_v32, %v2889_v44 }
  0xa4   : > { %v3187_v30 = vsel %vm1131_vm8, %v1088_v4, %v1053_v13  ;;  %v2161_v4 = vcombine.low %v2851_v49, %v2856_v53 }
  0xa5   : > { %2329 = vmatprep.mubr.msk.bf16.mxu0 %vm1226_vm9, %v3187_v30 }
  0xa7   : > { %v991_v8 = vpop.permute.xlu0 %990 }
  0xa8   : > { %v1115_v9 = vsel %vm1082_vm7, %v2167_v43, %v991_v8 }
  0xa9   : > { %v3198_v54 = vsel %vm1131_vm8, %v1115_v9, %v1071_v12 }
  0xaa   : > { %2346 = vmatmul.mubr.msk.bf16.vlgmr.msra.gmra.mxu1 %vm1226_vm9, %v3198_v54 }
  0xab   : > { %2362 = vmatpush3.bf16.msra.mxu1 %v1432_v22 }
  0xac   : > { %v975_v56 = vpop.permute.xlu1 %974 }
  0xad   : > { %v1091_v60 = vsel %vm1082_vm7, %v2159_v42, %v975_v56 }
  0xae   : > { %v3205_v41 = vsel %vm1131_vm8, %v1091_v60, %v1055_v15  ;;  %v993_v13 = vpop.permute.xlu0 %992 }
  0xaf   : > { %2330 = vmatmul.mubr.msk.bf16.vlgmr.msra.gmra.mxu0 %vm1226_vm9, %v3205_v41  ;;  %v1118_v12 = vsel %vm1082_vm7, %v2168_v1, %v993_v13 }
  0xb0   : > { %2396 = vmatpush3.bf16.msra.mxu0 %v1658_v63 }
  0xb2   : > { %v1073_v16 = vpop.permute.xlu0 %1072 }
  0xb3   : > { %v3213_v18 = vsel %vm1131_vm8, %v1118_v12, %v1073_v16  ;;  %v995_v21 = vpop.permute.xlu1 %994 }
  0xb4   : > { %2349 = vmatprep.mubr.msk.bf16.mxu1 %vm1226_vm9, %v3213_v18  ;;  %v1121_v17 = vsel %vm1082_vm7, %v2169_v34, %v995_v21 }
  0xb9   : > { %v1075_v15 = vpop.permute.xlu0 %1074 }
  0xba   : > { %v977_v23 = vpop.permute.xlu1 %976  ;;  %v3223_v24 = vsel %vm1131_vm8, %v1121_v17, %v1075_v15 }
  0xbb   : > { %2350 = vmatmul.mubr.msk.bf16.gmra.mxu1 %vm1226_vm9, %v3223_v24  ;;  %v1094_v40 = vsel %vm1082_vm7, %v2160_v7, %v977_v23 }
  0xbe   : > { %v979_v39 = vpop.permute.xlu1 %978 }
  0xbf   : > { %v1057_v19 = vpop.permute.xlu0 %1056  ;;  %v1097_v43 = vsel %vm1082_vm7, %v2161_v4, %v979_v39 }
  0xc0   : > { %v1139_v55 = vsel %vm1131_vm8, %v1094_v40, %v1057_v19 }
  0xc1   : > { %2333 = vmatprep.mubr.msk.bf16.mxu0 %vm1226_vm9, %v1139_v55 }
  0xc2   : > { %v1059_v8 = vpop.permute.xlu1 %1058 }
  0xc3   : > { %v1141_v9 = vsel %vm1131_vm8, %v1097_v43, %v1059_v8 }
  0xc4   : > { %2334 = vmatmul.mubr.msk.bf16.gmra.mxu0 %vm1226_vm9, %v1141_v9 }
  0xc8   : > { %v997_v2 = vpop.permute.xlu0 %996 }
  0xc9   : > { %v1124_v49 = vsel %vm1082_vm7, %v2170_v28, %v997_v2 }
  0xcb   : > { %v999_v22 = vpop.permute.xlu1 %998 }
  0xcc   : > { %v1077_v53 = vpop.permute.xlu0 %1076  ;;  %v1127_v50 = vsel %vm1082_vm7, %v2171_v10, %v999_v22 }
  0xcd   : > { %v3241_v45 = vsel %vm1131_vm8, %v1124_v49, %v1077_v53 }
  0xce   : > { %2353 = vmatprep.mubr.msk.bf16.mxu1 %vm1226_vm9, %v3241_v45 }
  0xd0   : > { %v1079_v42 = vpop.permute.xlu0 %1078 }
  0xd1   : > { %v3250_v56 = vsel %vm1131_vm8, %v1127_v50, %v1079_v42 }
  0xd2   : > { %2354 = vmatmul.mubr.msk.bf16.gmra.mxu1 %vm1226_vm9, %v3250_v56 }
  0xd3   : > { %v981_v32 = vpop.permute.xlu1 %980 }
  0xd4   : > { %v1100_v44 = vsel %vm1082_vm7, %v2162_v5, %v981_v32 }
  0xd6   : > { %v1061_v60 = vpop.permute.xlu0 %1060 }
  0xd7   : > { %v983_v63 = vpop.permute.xlu1 %982  ;;  %v1143_v1 = vsel %vm1131_vm8, %v1100_v44, %v1061_v60 }
  0xd8   : > { %2337 = vmatprep.mubr.msk.bf16.mxu0 %vm1226_vm9, %v1143_v1  ;;  %v1103_v51 = vsel %vm1082_vm7, %v2163_v6, %v983_v63 }
  0xdb   : > { %v1063_v57 = vpop.permute.xlu1 %1062 }
  0xdc   : > { %v1145_v10 = vsel %vm1131_vm8, %v1103_v51, %v1063_v57 }
  0xdd   : > { %2338 = vmatmul.mubr.msk.bf16.gmra.mxu0 %vm1226_vm9, %v1145_v10 }
  0xdf   : > { %v1081_v13 = vpop.permute.xlu1 %1080 }
  0xe1   : > { %v1001_v31 = vpop.permute.xlu0 %1000 }
  0xe2   : > { %v1130_v37 = vsel %vm1082_vm7, %v2172_v62, %v1001_v31 }
  0xe3   : > { %v1163_v5 = vsel %vm1131_vm8, %v1130_v37, %v1081_v13 }
  0xe4   : > { %2357 = vmatprep.mubr.msk.bf16.mxu1 %vm1226_vm9, %v1163_v5 }
  0xe5   : > { %v1207_v12 = vpop.permute.xlu0 %1206 }
  0xe6   : > { %v1215_v59 = vsel %vm1082_vm7, %v2206_v0, %v1207_v12 }
  0xe9   : > { %v1212_v14 = vpop.permute.xlu0 %1211  ;;  %v985_v6 = vpop.permute.xlu1 %984 }
  0xea   : > { %v1217_v16 = vsel %vm1131_vm8, %v1215_v59, %v1212_v14  ;;  %v1106_v46 = vsel %vm1082_vm7, %v2164_v36, %v985_v6 }
  0xeb   : > { %2358 = vmatmul.mubr.msk.bf16.gmra.mxu1 %vm1226_vm9, %v1217_v16 }
  0xef   : > { %v1065_v52 = vpop.permute.xlu0 %1064 }
  0xf0   : > { %v987_v62 = vpop.permute.xlu1 %986  ;;  %v1147_v21 = vsel %vm1131_vm8, %v1106_v46, %v1065_v52 }
  0xf1   : > { %2341 = vmatprep.mubr.msk.bf16.mxu0 %vm1226_vm9, %v1147_v21  ;;  %v1109_v26 = vsel %vm1082_vm7, %v2165_v58, %v987_v62 }
  0xf4   : > { %v1067_v3 = vpop.permute.xlu1 %1066 }
  0xf5   : > { %v1149_v0 = vsel %vm1131_vm8, %v1109_v26, %v1067_v3 }
  0xf6   : > { %2342 = vmatmul.mubr.msk.bf16.gmra.mxu0 %vm1226_vm9, %v1149_v0 }
  0xf7   : > { %2397 = vmatprep.mubr.msk.bf16.mxu0 %vm1226_vm9, %v3205_v41 }
  0xf8   : > { %v971_v20 = vpop.permute.xlu0 %970  ;;  %v1051_v61 = vpop.permute.xlu1 %1050 }
  0xf9   : > { %v1085_v36 = vsel %vm1082_vm7, %v2157_v11, %v971_v20 }
  0xfa   : > { %v1133_v34 = vsel %vm1131_vm8, %v1085_v36, %v1051_v61 }
  0xfb   : > { %2363 = vmatprep.mubr.msk.bf16.mxu1 %vm1226_vm9, %v1133_v34 }
  0xfc   : > { %2364 = vmatmul.mubr.msk.bf16.vlgmr.msra.gmra.mxu1 %vm1226_vm9, %v3187_v30  ;;  %v1641_v27 = vpop.permute.xlu1 %1640 }
  0xfd   : > { %2367 = vmatprep.mubr.msk.bf16.mxu1 %vm1226_vm9, %v3205_v41  ;;  %v1636_v33 = vpop.permute.xlu0 %1635 }
  0xfe   : > { %2398 = vmatmul.mubr.msk.bf16.vlgmr.msra.gmra.mxu0 %vm1226_vm9, %v1139_v55  ;;  %v1644_v48 = vsel %vm1082_vm7, %v2246_v38, %v1636_v33 }
  0xff   : > { %2401 = vmatprep.mubr.msk.bf16.mxu0 %vm1226_vm9, %v1141_v9  ;;  %v1646_v47 = vsel %vm1131_vm8, %v1644_v48, %v1641_v27 }
 0x104   : > { %2368 = vmatmul.mubr.msk.bf16.gmra.mxu1 %vm1226_vm9, %v1139_v55 }
 0x105   : > { %2371 = vmatprep.mubr.msk.bf16.mxu1 %vm1226_vm9, %v1141_v9 }
 0x106   : > { %2402 = vmatmul.mubr.msk.bf16.gmra.mxu0 %vm1226_vm9, %v1143_v1 }
 0x107   : > { %2405 = vmatprep.mubr.msk.bf16.mxu0 %vm1226_vm9, %v1145_v10 }
 0x10c   : > { %2372 = vmatmul.mubr.msk.bf16.gmra.mxu1 %vm1226_vm9, %v1143_v1  ;;  %v3401_v1 = vld [vmem:[%s3592_s2] ss:$0 sm:$0xff] }
 0x10d   : > { %2375 = vmatprep.mubr.msk.bf16.mxu1 %vm1226_vm9, %v1145_v10  ;;  %v3406_v10 = vld [vmem:[%s3593_s3] ss:$0 sm:$0xff] }
 0x10e   : > { %2406 = vmatmul.mubr.msk.bf16.gmra.mxu0 %vm1226_vm9, %v1147_v21 }
 0x10f   : > { %2409 = vmatprep.mubr.msk.bf16.mxu0 %vm1226_vm9, %v1149_v0 }
 0x114   : > { %2376 = vmatmul.mubr.msk.bf16.gmra.mxu1 %vm1226_vm9, %v1147_v21 }
 0x115   : > { %2379 = vmatprep.mubr.msk.bf16.mxu1 %vm1226_vm9, %v1149_v0 }
 0x116   : > { %2410 = vmatmul.mubr.msk.bf16.gmra.mxu0 %vm1226_vm9, %v3181_v29 }
 0x117   : > { %2413 = vmatprep.mubr.msk.bf16.mxu0 %vm1226_vm9, %v3198_v54 }
 0x11c   : > { %2380 = vmatmul.mubr.msk.bf16.gmra.mxu1 %vm1226_vm9, %v3181_v29 }
 0x11d   : > { %2383 = vmatprep.mubr.msk.bf16.mxu1 %vm1226_vm9, %v3198_v54 }
 0x11e   : > { %2414 = vmatmul.mubr.msk.bf16.gmra.mxu0 %vm1226_vm9, %v3213_v18 }
 0x11f   : > { %2417 = vmatprep.mubr.msk.bf16.mxu0 %vm1226_vm9, %v3223_v24 }
 0x124   : > { %2384 = vmatmul.mubr.msk.bf16.gmra.mxu1 %vm1226_vm9, %v3213_v18 }
 0x125   : > { %2387 = vmatprep.mubr.msk.bf16.mxu1 %vm1226_vm9, %v3223_v24 }
 0x126   : > { %2418 = vmatmul.mubr.msk.bf16.gmra.mxu0 %vm1226_vm9, %v3241_v45 }
 0x127   : > { %2421 = vmatprep.mubr.msk.bf16.mxu0 %vm1226_vm9, %v3250_v56 }
 0x12c   : > { %2388 = vmatmul.mubr.msk.bf16.gmra.mxu1 %vm1226_vm9, %v3241_v45 }
 0x12d   : > { %2391 = vmatprep.mubr.msk.bf16.mxu1 %vm1226_vm9, %v3250_v56 }
 0x12e   : > { %2422 = vmatmul.mubr.msk.bf16.gmra.mxu0 %vm1226_vm9, %v1163_v5 }
 0x12f   : > { %2425 = vmatprep.mubr.msk.bf16.mxu0 %vm1226_vm9, %v1217_v16 }
 0x134   : > { %2392 = vmatmul.mubr.msk.bf16.gmra.mxu1 %vm1226_vm9, %v1163_v5 }
 0x136   : > { %2426 = vmatmul.mubr.msk.bf16.gmra.mxu0 %vm1226_vm9, %v1646_v47 }
 0x16a   : > { %v3347_v58 = vpop.f32.mrf.mxu1 }
 0x16c   : > { %v3349_v11 = vpop.f32.mrf.mxu1 }
 0x16e   : > { %v3351_v30 = vpop.f32.mrf.mxu1 }
 0x16f   : > { %v2331_v29 = vpop.f32.mrf.mxu0 }
 0x170   : > { %v3353_v41 = vpop.f32.mrf.mxu1 }
 0x171   : > { %v1297_v54 = vpop.f32.mrf.mxu0 }
 0x173   : > { %v2332_v35 = vpop.f32.mrf.mxu0 }
 0x175   : > { %v1300_v38 = vpop.f32.mrf.mxu0 }
 0x17b   : > { %v3355_v25 = vpop.f32.mrf.mxu1 }
 0x17d   : > { %v3357_v18 = vpop.f32.mrf.mxu1 }
 0x17f   : > { %v3359_v17 = vpop.f32.mrf.mxu1 }
 0x181   : > { %v3361_v23 = vpop.f32.mrf.mxu1 }
 0x184   : > { %v2335_v15 = vpop.f32.mrf.mxu0 }
 0x186   : > { %v1313_v24 = vpop.f32.mrf.mxu0 }
 0x188   : > { %v2336_v4 = vpop.f32.mrf.mxu0 }
 0x18a   : > { %v3367_v40 = vpop.f32.mrf.mxu0 }
 0x192   : > { %v3363_v7 = vpop.f32.mrf.mxu1 }
 0x194   : > { %v3365_v39 = vpop.f32.mrf.mxu1 }
 0x196   : > { %v3369_v19 = vpop.f32.mrf.mxu1 }
 0x198   : > { %v3373_v43 = vpop.f32.mrf.mxu1 }
 0x19d   : > { %v3371_v55 = vpop.f32.mrf.mxu0 }
 0x19f   : > { %v3375_v8 = vpop.f32.mrf.mxu0 }
 0x1a1   : > { %v3379_v28 = vpop.f32.mrf.mxu0 }
 0x1a3   : > { %v3383_v49 = vpop.f32.mrf.mxu0 }
 0x1ab   : > { %v3377_v9 = vpop.f32.mrf.mxu1 }
 0x1ad   : > { %v3381_v2 = vpop.f32.mrf.mxu1 }
 0x1af   : > { %v3385_v53 = vpop.f32.mrf.mxu1 }
 0x1b1   : > { %v3391_v50 = vpop.f32.mrf.mxu1 }
 0x1b6   : > { %v3387_v22 = vpop.f32.mrf.mxu0 }
 0x1b8   : > { %v3389_v45 = vpop.f32.mrf.mxu0 }
 0x1ba   : > { %v3393_v42 = vpop.f32.mrf.mxu0 }
 0x1bc   : > { %v2365_v56 = vpop.f32.mrf.mxu1  ;;  %v3395_v32 = vpop.f32.mrf.mxu0 }
 0x1bd   : > { %v1477_v44 = vadd.f32 %v2365_v56, %v2331_v29 }
 0x1be   : > { %v1468_v60 = vpop.f32.mrf.mxu1  ;;  %v2399_v63 = vpop.f32.mrf.mxu0 }
 0x1bf   : > { %v1469_v51 = vadd.f32 %v1468_v60, %v1297_v54  ;;  %v1823_v57 = vadd.f32 %v2399_v63, %v1477_v44 }
 0x1c0   : > { %v2366_v13 = vpop.f32.mrf.mxu1  ;;  %v1694_v31 = vpop.f32.mrf.mxu0 }
 0x1c1   : > { %v1862_v37 = vmul.f32 %v3401_v1, %v1823_v57  ;;  %v1480_v5 = vadd.f32 %v2366_v13, %v2332_v35  ;;  %v1821_v12 = vadd.f32 %v1694_v31, %v1469_v51 }
 0x1c2   : > { %v1471_v59 = vpop.f32.mrf.mxu1  ;;  %v2400_v14 = vpop.f32.mrf.mxu0 }
 0x1c3   : > { %v1901_v6 = vadd.f32 %v3406_v10, %v1862_v37  ;;  %v1860_v16 = vmul.f32 %v3401_v1, %v1821_v12  ;;  %v1472_v46 = vadd.f32 %v1471_v59, %v1300_v38  ;;  %v1824_v52 = vadd.f32 %v2400_v14, %v1480_v5 }
 0x1c4   : > { %v2369_v62 = vpop.f32.mrf.mxu1  ;;  %v1697_v21 = vpop.f32.mrf.mxu0 }
 0x1c5   : > { %v1933_v26 = vmax.f32 %v1901_v6, 0.0  ;;  %v1899_v3 = vadd.f32 %v3406_v10, %v1860_v16  ;;  %v1863_v0 = vmul.f32 %v3401_v1, %v1824_v52  ;;  %v1493_v20 = vadd.f32 %v2369_v62, %v2335_v15 }
 0x1c6   : > { %v1822_v61 = vadd.f32 %v1697_v21, %v1472_v46  ;;  %v1484_v36 = vpop.f32.mrf.mxu1  ;;  %v2403_v34 = vpop.f32.mrf.mxu0 }
 0x1c7   : > { %1965 = vst [vmem:[%s3415_s6 + $0x10] sm:$0xff] %v1933_v26  ;;  %v1931_v33 = vmax.f32 %v1899_v3, 0.0  ;;  %v1902_v48 = vadd.f32 %v3406_v10, %v1863_v0  ;;  %v1485_v27 = vadd.f32 %v1484_v36, %v1313_v24  ;;  %v1827_v47 = vadd.f32 %v2403_v34, %v1493_v20 }
 0x1c8   : > { %v1861_v29 = vmul.f32 %v3401_v1, %v1822_v61  ;;  %v2370_v54 = vpop.f32.mrf.mxu1  ;;  %v1710_v35 = vpop.f32.mrf.mxu0 }
 0x1c9   : > { %1963 = vst [vmem:[%s3415_s6] sm:$0xff] %v1931_v33  ;;  %v1934_v38 = vmax.f32 %v1902_v48, 0.0  ;;  %v1866_v15 = vmul.f32 %v3401_v1, %v1827_v47  ;;  %v1496_v56 = vadd.f32 %v2370_v54, %v2336_v4  ;;  %v1825_v44 = vadd.f32 %v1710_v35, %v1485_v27 }
 0x1ca   : > { %v1900_v60 = vadd.f32 %v3406_v10, %v1861_v29  ;;  %v1487_v63 = vpop.f32.mrf.mxu1  ;;  %v2404_v51 = vpop.f32.mrf.mxu0 }
 0x1cb   : > { %1966 = vst [vmem:[%s3415_s6 + $0x18] sm:$0xff] %v1934_v38  ;;  %v1905_v24 = vadd.f32 %v3406_v10, %v1866_v15  ;;  %v1864_v57 = vmul.f32 %v3401_v1, %v1825_v44  ;;  %v1488_v13 = vadd.f32 %v1487_v63, %v3367_v40  ;;  %v1828_v31 = vadd.f32 %v2404_v51, %v1496_v56 }
 0x1cc   : > { %v1932_v37 = vmax.f32 %v1900_v60, 0.0  ;;  %v2373_v5 = vpop.f32.mrf.mxu1  ;;  %v1713_v12 = vpop.f32.mrf.mxu0 }
 0x1cd   : > { %v1937_v59 = vmax.f32 %v1905_v24, 0.0  ;;  %v1903_v4 = vadd.f32 %v3406_v10, %v1864_v57  ;;  %v1867_v14 = vmul.f32 %v3401_v1, %v1828_v31  ;;  %v1509_v6 = vadd.f32 %v2373_v5, %v3371_v55 }
 0x1ce   : > { %1964 = vst [vmem:[%s3415_s6 + $0x8] sm:$0xff] %v1932_v37  ;;  %v1826_v16 = vadd.f32 %v1713_v12, %v1488_v13  ;;  %v1500_v46 = vpop.f32.mrf.mxu1  ;;  %v2407_v52 = vpop.f32.mrf.mxu0 }
 0x1cf   : > { %1969 = vst [vmem:[%s3415_s6 + $0x30] sm:$0xff] %v1937_v59  ;;  %v1935_v62 = vmax.f32 %v1903_v4, 0.0  ;;  %v1906_v40 = vadd.f32 %v3406_v10, %v1867_v14  ;;  %v1501_v21 = vadd.f32 %v1500_v46, %v3375_v8  ;;  %v1831_v26 = vadd.f32 %v2407_v52, %v1509_v6 }
 0x1d0   : > { %v1865_v3 = vmul.f32 %v3401_v1, %v1826_v16  ;;  %v2374_v0 = vpop.f32.mrf.mxu1  ;;  %v1726_v20 = vpop.f32.mrf.mxu0 }
 0x1d1   : > { %1967 = vst [vmem:[%s3415_s6 + $0x20] sm:$0xff] %v1935_v62  ;;  %v1938_v61 = vmax.f32 %v1906_v40, 0.0  ;;  %v1870_v55 = vmul.f32 %v3401_v1, %v1831_v26  ;;  %v1512_v36 = vadd.f32 %v2374_v0, %v3379_v28  ;;  %v1829_v34 = vadd.f32 %v1726_v20, %v1501_v21 }
 0x1d2   : > { %v1904_v33 = vadd.f32 %v3406_v10, %v1865_v3  ;;  %v1503_v48 = vpop.f32.mrf.mxu1  ;;  %v2408_v27 = vpop.f32.mrf.mxu0 }
 0x1d3   : > { %1970 = vst [vmem:[%s3415_s6 + $0x38] sm:$0xff] %v1938_v61  ;;  %v1909_v8 = vadd.f32 %v3406_v10, %v1870_v55  ;;  %v1868_v47 = vmul.f32 %v3401_v1, %v1829_v34  ;;  %v1504_v29 = vadd.f32 %v1503_v48, %v3383_v49  ;;  %v1832_v54 = vadd.f32 %v2408_v27, %v1512_v36 }
 0x1d4   : > { %v1936_v35 = vmax.f32 %v1904_v33, 0.0  ;;  %v2377_v38 = vpop.f32.mrf.mxu1  ;;  %v1729_v15 = vpop.f32.mrf.mxu0 }
 0x1d5   : > { %v1941_v56 = vmax.f32 %v1909_v8, 0.0  ;;  %v1907_v28 = vadd.f32 %v3406_v10, %v1868_v47  ;;  %v1871_v44 = vmul.f32 %v3401_v1, %v1832_v54  ;;  %v1525_v60 = vadd.f32 %v2377_v38, %v3387_v22 }
 0x1d6   : > { %1968 = vst [vmem:[%s3415_s6 + $0x28] sm:$0xff] %v1936_v35  ;;  %v1830_v63 = vadd.f32 %v1729_v15, %v1504_v29  ;;  %v1516_v51 = vpop.f32.mrf.mxu1  ;;  %v2411_v24 = vpop.f32.mrf.mxu0 }
 0x1d7   : > { %1973 = vst [vmem:[%s3415_s6 + $0x50] sm:$0xff] %v1941_v56  ;;  %v1939_v57 = vmax.f32 %v1907_v28, 0.0  ;;  %v1910_v49 = vadd.f32 %v3406_v10, %v1871_v44  ;;  %v1517_v13 = vadd.f32 %v1516_v51, %v3389_v45  ;;  %v1835_v31 = vadd.f32 %v2411_v24, %v1525_v60 }
 0x1d8   : > { %v1869_v37 = vmul.f32 %v3401_v1, %v1830_v63  ;;  %v2378_v5 = vpop.f32.mrf.mxu1  ;;  %v1742_v12 = vpop.f32.mrf.mxu0 }
 0x1d9   : > { %1971 = vst [vmem:[%s3415_s6 + $0x40] sm:$0xff] %v1939_v57  ;;  %v1942_v59 = vmax.f32 %v1910_v49, 0.0  ;;  %v1874_v22 = vmul.f32 %v3401_v1, %v1835_v31  ;;  %v1528_v4 = vadd.f32 %v2378_v5, %v3393_v42  ;;  %v1833_v14 = vadd.f32 %v1742_v12, %v1517_v13 }
 0x1da   : > { %v1908_v6 = vadd.f32 %v3406_v10, %v1869_v37  ;;  %v1519_v16 = vpop.f32.mrf.mxu1  ;;  %v2412_v46 = vpop.f32.mrf.mxu0 }
 0x1db   : > { %1974 = vst [vmem:[%s3415_s6 + $0x58] sm:$0xff] %v1942_v59  ;;  %v1913_v45 = vadd.f32 %v3406_v10, %v1874_v22  ;;  %v1872_v52 = vmul.f32 %v3401_v1, %v1833_v14  ;;  %v1520_v62 = vadd.f32 %v1519_v16, %v3395_v32  ;;  %v1836_v40 = vadd.f32 %v2412_v46, %v1528_v4 }
 0x1dc   : > { %v1940_v21 = vmax.f32 %v1908_v6, 0.0  ;;  %v2381_v26 = vpop.f32.mrf.mxu1  ;;  %v1745_v3 = vpop.f32.mrf.mxu0 }
 0x1dd   : > { %v1945_v0 = vmax.f32 %v1913_v45, 0.0  ;;  %v1911_v42 = vadd.f32 %v3406_v10, %v1872_v52  ;;  %v1875_v20 = vmul.f32 %v3401_v1, %v1836_v40  ;;  %v1541_v61 = vadd.f32 %v2381_v26, %v3347_v58 }
 0x1de   : > { %1972 = vst [vmem:[%s3415_s6 + $0x48] sm:$0xff] %v1940_v21  ;;  %v1834_v55 = vadd.f32 %v1745_v3, %v1520_v62  ;;  %v1532_v36 = vpop.f32.mrf.mxu1  ;;  %v2415_v34 = vpop.f32.mrf.mxu0 }
 0x1df   : > { %1977 = vst [vmem:[%s3415_s6 + $0x70] sm:$0xff] %v1945_v0  ;;  %v1943_v33 = vmax.f32 %v1911_v42, 0.0  ;;  %v1914_v32 = vadd.f32 %v3406_v10, %v1875_v20  ;;  %v1533_v48 = vadd.f32 %v1532_v36, %v3349_v11  ;;  %v1839_v27 = vadd.f32 %v2415_v34, %v1541_v61 }
 0x1e0   : > { %v1873_v8 = vmul.f32 %v3401_v1, %v1834_v55  ;;  %v2382_v47 = vpop.f32.mrf.mxu1  ;;  %v1758_v29 = vpop.f32.mrf.mxu0 }
 0x1e1   : > { %1975 = vst [vmem:[%s3415_s6 + $0x60] sm:$0xff] %v1943_v33  ;;  %v1946_v54 = vmax.f32 %v1914_v32, 0.0  ;;  %v1878_v58 = vmul.f32 %v3401_v1, %v1839_v27  ;;  %v1544_v35 = vadd.f32 %v2382_v47, %v3351_v30  ;;  %v1837_v38 = vadd.f32 %v1758_v29, %v1533_v48 }
 0x1e2   : > { %v1912_v15 = vadd.f32 %v3406_v10, %v1873_v8  ;;  %v1535_v56 = vpop.f32.mrf.mxu1  ;;  %v2416_v28 = vpop.f32.mrf.mxu0 }
 0x1e3   : > { %1978 = vst [vmem:[%s3415_s6 + $0x78] sm:$0xff] %v1946_v54  ;;  %v1917_v11 = vadd.f32 %v3406_v10, %v1878_v58  ;;  %v1876_v44 = vmul.f32 %v3401_v1, %v1837_v38  ;;  %v1536_v60 = vadd.f32 %v1535_v56, %v3353_v41  ;;  %v1840_v63 = vadd.f32 %v2416_v28, %v1544_v35 }
 0x1e4   : > { %v1944_v51 = vmax.f32 %v1912_v15, 0.0  ;;  %v2385_v24 = vpop.f32.mrf.mxu1  ;;  %v1761_v57 = vpop.f32.mrf.mxu0 }
 0x1e5   : > { %v1949_v49 = vmax.f32 %v1917_v11, 0.0  ;;  %v1915_v30 = vadd.f32 %v3406_v10, %v1876_v44  ;;  %v1879_v13 = vmul.f32 %v3401_v1, %v1840_v63  ;;  %v1557_v31 = vadd.f32 %v2385_v24, %v3355_v25 }
 0x1e6   : > { %1976 = vst [vmem:[%s3415_s6 + $0x68] sm:$0xff] %v1944_v51  ;;  %v1838_v37 = vadd.f32 %v1761_v57, %v1536_v60  ;;  %v1548_v5 = vpop.f32.mrf.mxu1  ;;  %v2419_v12 = vpop.f32.mrf.mxu0 }
 0x1e7   : > { %1981 = vst [vmem:[%s3415_s6 + $0x90] sm:$0xff] %v1949_v49  ;;  %v1947_v59 = vmax.f32 %v1915_v30, 0.0  ;;  %v1918_v41 = vadd.f32 %v3406_v10, %v1879_v13  ;;  %v1549_v22 = vadd.f32 %v1548_v5, %v3357_v18  ;;  %v1843_v4 = vadd.f32 %v2419_v12, %v1557_v31 }
 0x1e8   : > { %v1877_v14 = vmul.f32 %v3401_v1, %v1838_v37  ;;  %v2386_v6 = vpop.f32.mrf.mxu1  ;;  %v1774_v16 = vpop.f32.mrf.mxu0 }
 0x1e9   : > { %1979 = vst [vmem:[%s3415_s6 + $0x80] sm:$0xff] %v1947_v59  ;;  %v1950_v46 = vmax.f32 %v1918_v41, 0.0  ;;  %v1882_v25 = vmul.f32 %v3401_v1, %v1843_v4  ;;  %v1560_v45 = vadd.f32 %v2386_v6, %v3359_v17  ;;  %v1841_v52 = vadd.f32 %v1774_v16, %v1549_v22 }
 0x1ea   : > { %v1916_v62 = vadd.f32 %v3406_v10, %v1877_v14  ;;  %v1551_v40 = vpop.f32.mrf.mxu1  ;;  %v2420_v21 = vpop.f32.mrf.mxu0 }
 0x1eb   : > { %1982 = vst [vmem:[%s3415_s6 + $0x98] sm:$0xff] %v1950_v46  ;;  %v1921_v18 = vadd.f32 %v3406_v10, %v1882_v25  ;;  %v1880_v26 = vmul.f32 %v3401_v1, %v1841_v52  ;;  %v1552_v3 = vadd.f32 %v1551_v40, %v3361_v23  ;;  %v1844_v0 = vadd.f32 %v2420_v21, %v1560_v45 }
 0x1ec   : > { %v1948_v42 = vmax.f32 %v1916_v62, 0.0  ;;  %v2389_v20 = vpop.f32.mrf.mxu1  ;;  %v1777_v61 = vpop.f32.mrf.mxu0 }
 0x1ed   : > { %v1953_v55 = vmax.f32 %v1921_v18, 0.0  ;;  %v1919_v17 = vadd.f32 %v3406_v10, %v1880_v26  ;;  %v1883_v36 = vmul.f32 %v3401_v1, %v1844_v0  ;;  %v1573_v34 = vadd.f32 %v2389_v20, %v3363_v7 }
 0x1ee   : > { %1980 = vst [vmem:[%s3415_s6 + $0x88] sm:$0xff] %v1948_v42  ;;  %v1842_v33 = vadd.f32 %v1777_v61, %v1552_v3  ;;  %v1564_v32 = vpop.f32.mrf.mxu1  ;;  %v2423_v48 = vpop.f32.mrf.mxu0 }
 0x1ef   : > { %1985 = vst [vmem:[%s3415_s6 + $0xb0] sm:$0xff] %v1953_v55  ;;  %v1951_v27 = vmax.f32 %v1919_v17, 0.0  ;;  %v1922_v23 = vadd.f32 %v3406_v10, %v1883_v36  ;;  %v1565_v8 = vadd.f32 %v1564_v32, %v3365_v39  ;;  %v1847_v47 = vadd.f32 %v2423_v48, %v1573_v34 }
 0x1f0   : > { %v1881_v29 = vmul.f32 %v3401_v1, %v1842_v33  ;;  %v2390_v54 = vpop.f32.mrf.mxu1  ;;  %v1790_v58 = vpop.f32.mrf.mxu0 }
 0x1f1   : > { %1983 = vst [vmem:[%s3415_s6 + $0xa0] sm:$0xff] %v1951_v27  ;;  %v1954_v35 = vmax.f32 %v1922_v23, 0.0  ;;  %v1886_v7 = vmul.f32 %v3401_v1, %v1847_v47  ;;  %v1576_v38 = vadd.f32 %v2390_v54, %v3369_v19  ;;  %v1845_v15 = vadd.f32 %v1790_v58, %v1565_v8 }
 0x1f2   : > { %v1920_v56 = vadd.f32 %v3406_v10, %v1881_v29  ;;  %v1567_v28 = vpop.f32.mrf.mxu1  ;;  %v2424_v11 = vpop.f32.mrf.mxu0 }
 0x1f3   : > { %1986 = vst [vmem:[%s3415_s6 + $0xb8] sm:$0xff] %v1954_v35  ;;  %v1925_v39 = vadd.f32 %v3406_v10, %v1886_v7  ;;  %v1884_v44 = vmul.f32 %v3401_v1, %v1845_v15  ;;  %v1568_v60 = vadd.f32 %v1567_v28, %v3373_v43  ;;  %v1848_v63 = vadd.f32 %v2424_v11, %v1576_v38 }
 0x1f4   : > { %v1952_v51 = vmax.f32 %v1920_v56, 0.0  ;;  %v2393_v24 = vpop.f32.mrf.mxu1  ;;  %v1793_v57 = vpop.f32.mrf.mxu0 }
 0x1f5   : > { %v1957_v49 = vmax.f32 %v1925_v39, 0.0  ;;  %v1923_v19 = vadd.f32 %v3406_v10, %v1884_v44  ;;  %v1887_v30 = vmul.f32 %v3401_v1, %v1848_v63  ;;  %v1589_v13 = vadd.f32 %v2393_v24, %v3377_v9 }
 0x1f6   : > { %1984 = vst [vmem:[%s3415_s6 + $0xa8] sm:$0xff] %v1952_v51  ;;  %v1846_v31 = vadd.f32 %v1793_v57, %v1568_v60  ;;  %v1580_v37 = vpop.f32.mrf.mxu1  ;;  %v2427_v5 = vpop.f32.mrf.mxu0 }
 0x1f7   : > { %1989 = vst [vmem:[%s3415_s6 + $0xd0] sm:$0xff] %v1957_v49  ;;  %v1955_v12 = vmax.f32 %v1923_v19, 0.0  ;;  %v1926_v43 = vadd.f32 %v3406_v10, %v1887_v30  ;;  %v1581_v59 = vadd.f32 %v1580_v37, %v3381_v2  ;;  %v1851_v41 = vadd.f32 %v2427_v5, %v1589_v13 }
 0x1f8   : > { %v1885_v22 = vmul.f32 %v3401_v1, %v1846_v31  ;;  %v2394_v4 = vpop.f32.mrf.mxu1  ;;  %v1806_v14 = vpop.f32.mrf.mxu0 }
 0x1f9   : > { %1987 = vst [vmem:[%s3415_s6 + $0xc0] sm:$0xff] %v1955_v12  ;;  %v1958_v6 = vmax.f32 %v1926_v43, 0.0  ;;  %v1890_v9 = vmul.f32 %v3401_v1, %v1851_v41  ;;  %v1592_v16 = vadd.f32 %v2394_v4, %v3385_v53  ;;  %v1849_v46 = vadd.f32 %v1806_v14, %v1581_v59 }
 0x1fa   : > { %v1924_v25 = vadd.f32 %v3406_v10, %v1885_v22  ;;  %v1583_v45 = vpop.f32.mrf.mxu1  ;;  %v2428_v52 = vpop.f32.mrf.mxu0 }
 0x1fb   : > { %1990 = vst [vmem:[%s3415_s6 + $0xd8] sm:$0xff] %v1958_v6  ;;  %v1929_v2 = vadd.f32 %v3406_v10, %v1890_v9  ;;  %v1888_v62 = vmul.f32 %v3401_v1, %v1849_v46  ;;  %v1584_v40 = vadd.f32 %v1583_v45, %v3391_v50  ;;  %v1852_v21 = vadd.f32 %v2428_v52, %v1592_v16 }
 0x1fc   : > { %v1956_v18 = vmax.f32 %v1924_v25, 0.0  ;;  %v1809_v53 = vpop.f32.mrf.mxu0 }
 0x1fd   : > { %v1961_v26 = vmax.f32 %v1929_v2, 0.0  ;;  %v1927_v3 = vadd.f32 %v3406_v10, %v1888_v62  ;;  %v1891_v0 = vmul.f32 %v3401_v1, %v1852_v21  ;;  %v1850_v42 = vadd.f32 %v1809_v53, %v1584_v40 }
 0x1fe   : > { %1988 = vst [vmem:[%s3415_s6 + $0xc8] sm:$0xff] %v1956_v18 }
 0x1ff   : > { %1993 = vst [vmem:[%s3415_s6 + $0xf0] sm:$0xff] %v1961_v26  ;;  %v1959_v20 = vmax.f32 %v1927_v3, 0.0  ;;  %v1930_v61 = vadd.f32 %v3406_v10, %v1891_v0  ;;  %v1889_v50 = vmul.f32 %v3401_v1, %v1850_v42 }
 0x201   : > { %1991 = vst [vmem:[%s3415_s6 + $0xe0] sm:$0xff] %v1959_v20  ;;  %v1962_v55 = vmax.f32 %v1930_v61, 0.0  ;;  %v1928_v17 = vadd.f32 %v3406_v10, %v1889_v50 }
 0x203   : > { %1994 = vst [vmem:[%s3415_s6 + $0xf8] sm:$0xff] %v1962_v55  ;;  %v1960_v36 = vmax.f32 %v1928_v17, 0.0 }
 0x205   : > { %1992 = vst [vmem:[%s3415_s6 + $0xe8] sm:$0xff] %v1960_v36 }
 0x206   : > { %2534 = shalt.err (!%p2531_p5)
}
 0x207   : > { %s2535_s22 = scalar_lea.hbm %s3536_s12, 4096  ;;  %s2539_s30 = scalar_lea.hbm %s3594_s4, 8192 }
 0x208   : > { %p2536_p6 = scmp.ne.s32.totalorder %s3536_s12, %s2535_s22  ;;  %p2540_p10 = scmp.lt.s32.totalorder %s3536_s12, %s3594_s4 }
 0x209   : > { %p2541_p11 = scmp.lt.s32.totalorder %s2539_s30, %s2535_s22 }
 0x20a   : > { %p2537_p7 = pnand %p2536_p6, %p2668_p4 }
 0x20b   : > { %p2542_p12 = por %p2541_p11, %p2540_p10 }
 0x20c   : > { %p2538_p9 = pneg %p2537_p7 }
 0x20e   : > { %p2543_p13 = pnand %p2542_p12, %p2538_p9 }
 0x210   : > { %2546 = shalt.err (!%p2543_p13)
}
 0x211   : > { %s2602_s7 = smov 128  }
 0x212   : > { %2436 = dma.vmem_to_hbm [thread:$0]  (%p2668_p4), %s3539_s9, 4096, %s3536_s12, %s3544_s18, %s2602_s7, %s2602_s7, %s2599_s8  }
 0x213 PF: > { %p2442_p0 = scmp.ge.s32.totalorder %s2597_s20, 2  ;;  %s2028_s10 = sand.u32 1, %s2577_s15  }
 0x214   : > { %s2029_s11 = scalar_lea.sflag [#allocation3], %s2028_s10 }
 0x215   : > { %p2439_p1 = pnand %p2442_p0, %p2675_p8 }
 0x217   : > { %p2440_p2 = pneg %p2439_p1 }
 0x219   : > { %2572 = dma.done.wait (%p2440_p2), %s2029_s11, 4096  }
 0x21a   : > { %2574 = vsyncadd (%p2440_p2), %s2029_s11, 4294963200  ;;  %s17_s20 = sadd.s32 1, %s2597_s20   ;;  %s3601_s15 = smov %s2581_s16 }
 0x21b   : > { %p14_p3 = scmp.ge.s32.totalorder %s17_s20, 4   ;;  %s3602_s16 = smov %s2585_s17 }
 0x21c   : > { %s3603_s17 = smov %s2681_s28  ;;  %s3604_s18 = smov %s2593_s19 }
 0x21d   : > { %s3605_s19 = smov %s3607_s23  ;;  %16 = sbr.rel (!%p14_p3) target bundleno = 4 (0x4), region = 83 }
 0x222   :  { %2034 = vsyncpa [#allocation3], 1 }
 0x223   :  { %2036 = vsyncpa [#allocation3 + $0x1], 1 }

</bundles_post_ra>
